<compile_context>
chip_gen: v5e
topology: v5e:2x2
jax: 0.10.0
libtpu: 0.0.40
codegen_flags: <defaults>
</compile_context>

<pallas_src>
import jax
import jax.numpy as jnp
from jax.experimental import pallas as pl
from jax.experimental.pallas import tpu as pltpu

MARGIN = 1.0
NORMALIZE = True
EPS = 1e-8        # torch F.cosine_similarity eps, applied as max(||a||*||e||, eps)
OUT_LANES = 128   # packed scalar output: lane 0 = loss, lane 1 = mean score


# ----------------------------- in-kernel helpers -----------------------------

def _stable_rank(x, descending):
    """rank[b, j] = position of x[b, j] in the (stable) sorted order of row b."""
    _, K = x.shape
    xj = x[:, :, None]                                   # value whose rank we compute
    xi = x[:, None, :]                                   # values it is compared against
    before = (xi > xj) if descending else (xi < xj)
    j_idx = jax.lax.broadcasted_iota(jnp.int32, (1, K, K), 1)
    i_idx = jax.lax.broadcasted_iota(jnp.int32, (1, K, K), 2)
    tie_before = jnp.logical_and(xi == xj, i_idx < j_idx)          # stable tie-break
    return jnp.sum(jnp.logical_or(before, tie_before).astype(jnp.int32),
                   axis=-1)                               # (B, K) int32


def _gather_sorted(x, rank, out_len, offset):
    """out[b, k] = x[b, j] where rank[b, j] == k + offset, for k in [0, out_len).

    Folding `offset` in here implements _process_shape's prefix-trim of the
    sorted array without a non-lane-aligned slice (pure VPU select + reduce).
    """
    k_iota = jax.lax.broadcasted_iota(jnp.int32, (1, out_len, 1), 1) + offset
    onehot = rank[:, None, :] == k_iota                   # (B, out_len, Ksrc) bool
    return jnp.sum(jnp.where(onehot, x[:, None, :], 0.0), axis=-1)  # (B, out_len)


# --------------------------------- the kernel --------------------------------

def _scoring_loss_kernel(model_ref, search_ref, pos_ref, neg_ref, out_ref):
    # Keep explicit f32 at entry (no-op for f32 inputs; required if bf16 on v5e).
    model = model_ref[...].astype(jnp.float32)    # (B, D)
    search = search_ref[...].astype(jnp.float32)  # (B, D)
    pos = pos_ref[...].astype(jnp.float32)        # (B, P, D)
    neg = neg_ref[...].astype(jnp.float32)        # (B, N, D)

    B, P, D = pos.shape
    N = neg.shape[1]

    # --- all four cosine contractions as one batched MXU matmul ---
    # anchors row 0 = search, row 1 = model; encs = [pos ; neg].
    anchors = jnp.concatenate([search[:, None, :], model[:, None, :]], axis=1)  # (B,2,D)
    encs = jnp.concatenate([pos, neg], axis=1)                                  # (B,P+N,D)
    dots = jnp.einsum('bad,bkd->bak', anchors, encs,
                      preferred_element_type=jnp.float32,
                      precision=jax.lax.Precision.HIGHEST)                      # (B,2,P+N)

    # Shared norms (each reduce done once), rsqrt on the EUP instead of sqrt+div.
    a2 = jnp.sum(anchors * anchors, axis=-1)                                    # (B,2)
    e2 = jnp.sum(encs * encs, axis=-1)                                          # (B,P+N)
    # max(||a||*||e||, eps) == sqrt(max(a2*e2, eps^2))  ->  multiply by rsqrt.
    inv_denom = jax.lax.rsqrt(jnp.maximum(a2[:, :, None] * e2[:, None, :],
                                          EPS * EPS))                           # (B,2,P+N)
    cos = dots * inv_denom                                                      # (B,2,P+N)

    s_pos = cos[:, 0, :P]                                                       # (B,P)
    s_neg = cos[:, 0, P:]                                                       # (B,N)
    m_pos = cos[:, 1, :P]                                                       # (B,P)
    m_neg = cos[:, 1, P:]                                                       # (B,N)

    # --- _calc_score on the search-branch scores ---
    # stable rank + one-hot gather; _process_shape trim folded into the offset.
    K = min(P, N)
    rank_pos = _stable_rank(s_pos, descending=True)
    rank_neg = _stable_rank(s_neg, descending=False)
    pos_sorted = _gather_sorted(s_pos, rank_pos, out_len=K, offset=P - K)
    neg_sorted = _gather_sorted(s_neg, rank_neg, out_len=K, offset=N - K)

    comparison = jnp.where(neg_sorted > pos_sorted, 1.0, 0.0)                   # (B,K)
    total_score = jnp.sum(comparison, axis=-1, keepdims=True)                   # (B,1)
    if NORMALIZE:
        total_score = total_score * (1.0 / float(K))

    # Faithful to torch: (B,) + (B,1) broadcasts to a (B,B) matrix before mean.
    diff = jnp.mean(m_neg, axis=-1) - jnp.mean(m_pos, axis=-1)                  # (B,)
    loss_mat = jnp.maximum(diff[None, :] + total_score + MARGIN, 0.0)           # (B,B)

    loss_val = jnp.mean(loss_mat)
    score_val = jnp.mean(total_score)

    # Single lane-dense output slab: lane 0 = loss, lane 1 = mean score.
    lane = jax.lax.broadcasted_iota(jnp.int32, (1, OUT_LANES), 1)
    out_ref[...] = jnp.where(lane == 0, loss_val,
                             jnp.where(lane == 1, score_val, 0.0))


# --------------------------------- wrapper -----------------------------------

@jax.jit
def scoring_loss_with_model_search(model_out, search_out, pos_encs, neg_encs):
    out = pl.pallas_call(
        _scoring_loss_kernel,
        out_shape=jax.ShapeDtypeStruct((1, OUT_LANES), jnp.float32),
        # Single program instance: no grid, whole arrays live in VMEM.
        in_specs=[pl.BlockSpec(memory_space=pltpu.MemorySpace.VMEM)] * 4,
        out_specs=pl.BlockSpec(memory_space=pltpu.MemorySpace.VMEM),
    )(model_out, search_out, pos_encs, neg_encs)
    # torch returns (0-dim loss, total_score.mean(dim=0) of shape (1,))
    return out[0, 0], out[0, 1:2]


# ------------------------------ pure-JAX reference ----------------------------

def _reference(model_out, search_out, pos_encs, neg_encs):
    def cos(a, e):
        dot = jnp.sum(a[:, None, :] * e, axis=-1)
        denom = jnp.maximum(
            jnp.linalg.norm(a, axis=-1)[:, None] * jnp.linalg.norm(e, axis=-1), EPS)
        return dot / denom

    s_pos, s_neg = cos(search_out, pos_encs), cos(search_out, neg_encs)
    m_pos, m_neg = cos(model_out, pos_encs), cos(model_out, neg_encs)

    pos_sorted = -jnp.sort(-s_pos, axis=1)       # descending
    neg_sorted = jnp.sort(s_neg, axis=1)         # ascending
    P, N = pos_sorted.shape[1], neg_sorted.shape[1]
    if P > N:
        pos_sorted = pos_sorted[:, P - N:]
    elif N > P:
        neg_sorted = neg_sorted[:, N - P:]
    comparison = jnp.where(neg_sorted > pos_sorted, 1.0, 0.0)
    total_score = jnp.sum(comparison, axis=1, keepdims=True)
    if NORMALIZE:
        total_score = total_score / comparison.shape[1]

    diff = jnp.mean(m_neg, axis=1) - jnp.mean(m_pos, axis=1)
    loss = jnp.maximum(diff + total_score + MARGIN, 0.0)
    return jnp.mean(loss), jnp.mean(total_score, axis=0)


# ----------------------------------- main -------------------------------------

if __name__ == "__main__":
    key = jax.random.PRNGKey(0)
    k1, k2, k3, k4, k5 = jax.random.split(key, 5)

    B, P, N, D = 4, 8, 8, 128
    model_out = jax.random.normal(k1, (B, D), dtype=jnp.float32)
    search_out = jax.random.normal(k2, (B, D), dtype=jnp.float32)
    pos_encs = jax.random.normal(k3, (B, P, D), dtype=jnp.float32)
    neg_encs = jax.random.normal(k4, (B, N, D), dtype=jnp.float32)

    loss, score = scoring_loss_with_model_search(model_out, search_out,
                                                 pos_encs, neg_encs)
    jax.block_until_ready((loss, score))
    ref_loss, ref_score = _reference(model_out, search_out, pos_encs, neg_encs)
    assert jnp.allclose(loss, ref_loss, atol=1e-4), (loss, ref_loss)
    assert jnp.allclose(score, ref_score, atol=1e-4), (score, ref_score)

    # Exercise the P != N trim path (folded into the rank/gather offset).
    P2 = 10
    pos_encs2 = jax.random.normal(k5, (B, P2, D), dtype=jnp.float32)
    loss2, score2 = scoring_loss_with_model_search(model_out, search_out,
                                                   pos_encs2, neg_encs)
    jax.block_until_ready((loss2, score2))
    ref_loss2, ref_score2 = _reference(model_out, search_out, pos_encs2, neg_encs)
    assert jnp.allclose(loss2, ref_loss2, atol=1e-4), (loss2, ref_loss2)
    assert jnp.allclose(score2, ref_score2, atol=1e-4), (score2, ref_score2)

    print("KERNEL_OK")
</pallas_src>

<mosaic_0001>
module attributes {stable_mosaic.version = 11 : i64} {
  func.func @_scoring_loss_kernel(%arg0: memref<4x128xf32, #tpu.memory_space<vmem>>, %arg1: memref<4x128xf32, #tpu.memory_space<vmem>>, %arg2: memref<4x8x128xf32, #tpu.memory_space<vmem>>, %arg3: memref<4x8x128xf32, #tpu.memory_space<vmem>>, %arg4: memref<1x128xf32, #tpu.memory_space<vmem>>) attributes {dimension_semantics = [], scalar_prefetch = 0 : i64, scratch_operands = 0 : i64, tpu.core_type = #tpu.core_type<tc>} {
    %c0 = arith.constant 0 : index
    %c0_0 = arith.constant 0 : index
    %0 = vector.load %arg0[%c0, %c0_0] : memref<4x128xf32, #tpu.memory_space<vmem>>, vector<4x128xf32>
    %c0_1 = arith.constant 0 : index
    %c0_2 = arith.constant 0 : index
    %1 = vector.load %arg1[%c0_1, %c0_2] : memref<4x128xf32, #tpu.memory_space<vmem>>, vector<4x128xf32>
    %c0_3 = arith.constant 0 : index
    %c0_4 = arith.constant 0 : index
    %c0_5 = arith.constant 0 : index
    %2 = vector.load %arg2[%c0_3, %c0_4, %c0_5] : memref<4x8x128xf32, #tpu.memory_space<vmem>>, vector<4x8x128xf32>
    %c0_6 = arith.constant 0 : index
    %c0_7 = arith.constant 0 : index
    %c0_8 = arith.constant 0 : index
    %3 = vector.load %arg3[%c0_6, %c0_7, %c0_8] : memref<4x8x128xf32, #tpu.memory_space<vmem>>, vector<4x8x128xf32>
    %4 = vector.shape_cast %1 : vector<4x128xf32> to vector<4x1x128xf32>
    %5 = vector.shape_cast %0 : vector<4x128xf32> to vector<4x1x128xf32>
    %6 = tpu.concatenate %4, %5 in 1 : vector<4x1x128xf32>, vector<4x1x128xf32> -> vector<4x2x128xf32>
    %7 = tpu.concatenate %2, %3 in 1 : vector<4x8x128xf32>, vector<4x8x128xf32> -> vector<4x16x128xf32>
    "tpu.trace_start"() <{level = 10 : i32, message = "bad,bkd->bak"}> : () -> ()
    %cst = arith.constant dense<0.000000e+00> : vector<4x2x16xf32>
    %8 = tpu.matmul %6, %7, %cst {dimension_numbers = #tpu.dot_dimension_numbers<[2], [2], [1], [1], [0, 0, 0, 1, 1, 1], [0], [0]>, precision = #tpu.contract_precision<fp32>} : vector<4x2x128xf32>, vector<4x16x128xf32>, vector<4x2x16xf32> -> vector<4x2x16xf32>
    "tpu.trace_stop"() : () -> ()
    %9 = arith.mulf %6, %6 : vector<4x2x128xf32>
    %cst_9 = arith.constant dense<0.000000e+00> : vector<4x2xf32>
    %10 = vector.multi_reduction <add>, %9, %cst_9 [2] : vector<4x2x128xf32> to vector<4x2xf32>
    %11 = arith.mulf %7, %7 : vector<4x16x128xf32>
    %cst_10 = arith.constant dense<0.000000e+00> : vector<4x16xf32>
    %12 = vector.multi_reduction <add>, %11, %cst_10 [2] : vector<4x16x128xf32> to vector<4x16xf32>
    %13 = vector.shape_cast %10 : vector<4x2xf32> to vector<4x2x1xf32>
    %14 = vector.shape_cast %12 : vector<4x16xf32> to vector<4x1x16xf32>
    %15 = vector.broadcast %13 : vector<4x2x1xf32> to vector<4x2x16xf32>
    %16 = vector.broadcast %14 : vector<4x1x16xf32> to vector<4x2x16xf32>
    %17 = arith.mulf %15, %16 : vector<4x2x16xf32>
    %cst_11 = arith.constant 1.000000e-16 : f32
    %18 = vector.broadcast %cst_11 : f32 to vector<4x2x16xf32>
    %19 = arith.maximumf %17, %18 : vector<4x2x16xf32>
    %20 = math.rsqrt %19 : vector<4x2x16xf32>
    %21 = arith.mulf %8, %20 : vector<4x2x16xf32>
    %22 = vector.extract_strided_slice %21 {offsets = [0, 0, 0], sizes = [4, 1, 8], strides = [1, 1, 1]} : vector<4x2x16xf32> to vector<4x1x8xf32>
    %23 = vector.shape_cast %22 : vector<4x1x8xf32> to vector<4x8xf32>
    %24 = vector.extract_strided_slice %21 {offsets = [0, 0, 8], sizes = [4, 1, 8], strides = [1, 1, 1]} : vector<4x2x16xf32> to vector<4x1x8xf32>
    %25 = vector.shape_cast %24 : vector<4x1x8xf32> to vector<4x8xf32>
    %26 = vector.extract_strided_slice %21 {offsets = [0, 1, 0], sizes = [4, 1, 8], strides = [1, 1, 1]} : vector<4x2x16xf32> to vector<4x1x8xf32>
    %27 = vector.shape_cast %26 : vector<4x1x8xf32> to vector<4x8xf32>
    %28 = vector.extract_strided_slice %21 {offsets = [0, 1, 8], sizes = [4, 1, 8], strides = [1, 1, 1]} : vector<4x2x16xf32> to vector<4x1x8xf32>
    %29 = vector.shape_cast %28 : vector<4x1x8xf32> to vector<4x8xf32>
    %30 = vector.shape_cast %23 : vector<4x8xf32> to vector<4x8x1xf32>
    %31 = vector.shape_cast %23 : vector<4x8xf32> to vector<4x1x8xf32>
    %32 = vector.broadcast %31 : vector<4x1x8xf32> to vector<4x8x8xf32>
    %33 = vector.broadcast %30 : vector<4x8x1xf32> to vector<4x8x8xf32>
    %34 = arith.cmpf ogt, %32, %33 : vector<4x8x8xf32>
    %35 = tpu.iota {dimensions = array<i32: 1>} : vector<1x8x8xi32>
    %36 = tpu.iota {dimensions = array<i32: 2>} : vector<1x8x8xi32>
    %37 = vector.broadcast %31 : vector<4x1x8xf32> to vector<4x8x8xf32>
    %38 = vector.broadcast %30 : vector<4x8x1xf32> to vector<4x8x8xf32>
    %39 = arith.cmpf oeq, %37, %38 : vector<4x8x8xf32>
    %40 = arith.cmpi slt, %36, %35 : vector<1x8x8xi32>
    %41 = vector.broadcast %40 : vector<1x8x8xi1> to vector<4x8x8xi1>
    %42 = arith.andi %39, %41 : vector<4x8x8xi1>
    %43 = arith.ori %34, %42 : vector<4x8x8xi1>
    %44 = arith.extui %43 : vector<4x8x8xi1> to vector<4x8x8xi32>
    %cst_12 = arith.constant dense<0> : vector<4x8xi32>
    %45 = vector.multi_reduction <add>, %44, %cst_12 [2] : vector<4x8x8xi32> to vector<4x8xi32>
    %46 = vector.shape_cast %25 : vector<4x8xf32> to vector<4x8x1xf32>
    %47 = vector.shape_cast %25 : vector<4x8xf32> to vector<4x1x8xf32>
    %48 = vector.broadcast %47 : vector<4x1x8xf32> to vector<4x8x8xf32>
    %49 = vector.broadcast %46 : vector<4x8x1xf32> to vector<4x8x8xf32>
    %50 = arith.cmpf olt, %48, %49 : vector<4x8x8xf32>
    %51 = tpu.iota {dimensions = array<i32: 1>} : vector<1x8x8xi32>
    %52 = tpu.iota {dimensions = array<i32: 2>} : vector<1x8x8xi32>
    %53 = vector.broadcast %47 : vector<4x1x8xf32> to vector<4x8x8xf32>
    %54 = vector.broadcast %46 : vector<4x8x1xf32> to vector<4x8x8xf32>
    %55 = arith.cmpf oeq, %53, %54 : vector<4x8x8xf32>
    %56 = arith.cmpi slt, %52, %51 : vector<1x8x8xi32>
    %57 = vector.broadcast %56 : vector<1x8x8xi1> to vector<4x8x8xi1>
    %58 = arith.andi %55, %57 : vector<4x8x8xi1>
    %59 = arith.ori %50, %58 : vector<4x8x8xi1>
    %60 = arith.extui %59 : vector<4x8x8xi1> to vector<4x8x8xi32>
    %cst_13 = arith.constant dense<0> : vector<4x8xi32>
    %61 = vector.multi_reduction <add>, %60, %cst_13 [2] : vector<4x8x8xi32> to vector<4x8xi32>
    %62 = tpu.iota {dimensions = array<i32: 1>} : vector<1x8x1xi32>
    %c0_i32 = arith.constant 0 : i32
    %63 = vector.broadcast %c0_i32 : i32 to vector<1x8x1xi32>
    %64 = arith.addi %62, %63 : vector<1x8x1xi32>
    %65 = vector.shape_cast %45 : vector<4x8xi32> to vector<4x1x8xi32>
    %66 = vector.broadcast %65 : vector<4x1x8xi32> to vector<4x8x8xi32>
    %67 = vector.broadcast %64 : vector<1x8x1xi32> to vector<4x8x8xi32>
    %68 = arith.cmpi eq, %66, %67 : vector<4x8x8xi32>
    %69 = vector.shape_cast %23 : vector<4x8xf32> to vector<4x1x8xf32>
    %cst_14 = arith.constant 0.000000e+00 : f32
    %70 = vector.shape_cast %69 : vector<4x1x8xf32> to vector<4x1x8xf32>
    %71 = vector.broadcast %70 : vector<4x1x8xf32> to vector<4x8x8xf32>
    %72 = vector.broadcast %cst_14 : f32 to vector<4x8x8xf32>
    %73 = arith.select %68, %71, %72 : vector<4x8x8xi1>, vector<4x8x8xf32>
    %cst_15 = arith.constant dense<0.000000e+00> : vector<4x8xf32>
    %74 = vector.multi_reduction <add>, %73, %cst_15 [2] : vector<4x8x8xf32> to vector<4x8xf32>
    %75 = tpu.iota {dimensions = array<i32: 1>} : vector<1x8x1xi32>
    %c0_i32_16 = arith.constant 0 : i32
    %76 = vector.broadcast %c0_i32_16 : i32 to vector<1x8x1xi32>
    %77 = arith.addi %75, %76 : vector<1x8x1xi32>
    %78 = vector.shape_cast %61 : vector<4x8xi32> to vector<4x1x8xi32>
    %79 = vector.broadcast %78 : vector<4x1x8xi32> to vector<4x8x8xi32>
    %80 = vector.broadcast %77 : vector<1x8x1xi32> to vector<4x8x8xi32>
    %81 = arith.cmpi eq, %79, %80 : vector<4x8x8xi32>
    %82 = vector.shape_cast %25 : vector<4x8xf32> to vector<4x1x8xf32>
    %cst_17 = arith.constant 0.000000e+00 : f32
    %83 = vector.shape_cast %82 : vector<4x1x8xf32> to vector<4x1x8xf32>
    %84 = vector.broadcast %83 : vector<4x1x8xf32> to vector<4x8x8xf32>
    %85 = vector.broadcast %cst_17 : f32 to vector<4x8x8xf32>
    %86 = arith.select %81, %84, %85 : vector<4x8x8xi1>, vector<4x8x8xf32>
    %cst_18 = arith.constant dense<0.000000e+00> : vector<4x8xf32>
    %87 = vector.multi_reduction <add>, %86, %cst_18 [2] : vector<4x8x8xf32> to vector<4x8xf32>
    %88 = arith.cmpf ogt, %87, %74 : vector<4x8xf32>
    %cst_19 = arith.constant 1.000000e+00 : f32
    %cst_20 = arith.constant 0.000000e+00 : f32
    %89 = vector.broadcast %cst_19 : f32 to vector<4x8xf32>
    %90 = vector.broadcast %cst_20 : f32 to vector<4x8xf32>
    %91 = arith.select %88, %89, %90 : vector<4x8xi1>, vector<4x8xf32>
    %cst_21 = arith.constant dense<0.000000e+00> : vector<4xf32>
    %92 = vector.multi_reduction <add>, %91, %cst_21 [1] : vector<4x8xf32> to vector<4xf32>
    %93 = vector.shape_cast %92 : vector<4xf32> to vector<4x1xf32>
    %cst_22 = arith.constant 1.250000e-01 : f32
    %94 = vector.broadcast %cst_22 : f32 to vector<4x1xf32>
    %95 = arith.mulf %93, %94 : vector<4x1xf32>
    %cst_23 = arith.constant dense<0.000000e+00> : vector<4xf32>
    %96 = vector.multi_reduction <add>, %29, %cst_23 [1] : vector<4x8xf32> to vector<4xf32>
    %cst_24 = arith.constant 8.000000e+00 : f32
    %97 = vector.broadcast %cst_24 : f32 to vector<4xf32>
    %98 = arith.divf %96, %97 : vector<4xf32>
    %cst_25 = arith.constant dense<0.000000e+00> : vector<4xf32>
    %99 = vector.multi_reduction <add>, %27, %cst_25 [1] : vector<4x8xf32> to vector<4xf32>
    %cst_26 = arith.constant 8.000000e+00 : f32
    %100 = vector.broadcast %cst_26 : f32 to vector<4xf32>
    %101 = arith.divf %99, %100 : vector<4xf32>
    %102 = arith.subf %98, %101 : vector<4xf32>
    %103 = vector.shape_cast %102 : vector<4xf32> to vector<1x4xf32>
    %104 = vector.broadcast %103 : vector<1x4xf32> to vector<4x4xf32>
    %105 = vector.broadcast %95 : vector<4x1xf32> to vector<4x4xf32>
    %106 = arith.addf %104, %105 : vector<4x4xf32>
    %cst_27 = arith.constant 1.000000e+00 : f32
    %107 = vector.broadcast %cst_27 : f32 to vector<4x4xf32>
    %108 = arith.addf %106, %107 : vector<4x4xf32>
    %cst_28 = arith.constant 0.000000e+00 : f32
    %109 = vector.broadcast %cst_28 : f32 to vector<4x4xf32>
    %110 = arith.maximumf %108, %109 : vector<4x4xf32>
    %111 = vector.shape_cast %110 : vector<4x4xf32> to vector<1x4x4xf32>
    %cst_29 = arith.constant dense<0.000000e+00> : vector<1xf32>
    %112 = vector.multi_reduction <add>, %111, %cst_29 [1, 2] : vector<1x4x4xf32> to vector<1xf32>
    %113 = vector.shape_cast %112 : vector<1xf32> to vector<1x1x1xf32>
    %114 = vector.extract %113[0, 0, 0] : f32 from vector<1x1x1xf32>
    %cst_30 = arith.constant 1.600000e+01 : f32
    %115 = arith.divf %114, %cst_30 : f32
    %116 = vector.shape_cast %95 : vector<4x1xf32> to vector<1x4x1xf32>
    %cst_31 = arith.constant dense<0.000000e+00> : vector<1xf32>
    %117 = vector.multi_reduction <add>, %116, %cst_31 [1, 2] : vector<1x4x1xf32> to vector<1xf32>
    %118 = vector.shape_cast %117 : vector<1xf32> to vector<1x1x1xf32>
    %119 = vector.extract %118[0, 0, 0] : f32 from vector<1x1x1xf32>
    %cst_32 = arith.constant 4.000000e+00 : f32
    %120 = arith.divf %119, %cst_32 : f32
    %121 = tpu.iota {dimensions = array<i32: 1>} : vector<1x128xi32>
    %c0_i32_33 = arith.constant 0 : i32
    %122 = vector.broadcast %c0_i32_33 : i32 to vector<1x128xi32>
    %123 = arith.cmpi eq, %121, %122 : vector<1x128xi32>
    %c1_i32 = arith.constant 1 : i32
    %124 = vector.broadcast %c1_i32 : i32 to vector<1x128xi32>
    %125 = arith.cmpi eq, %121, %124 : vector<1x128xi32>
    %cst_34 = arith.constant 0.000000e+00 : f32
    %126 = vector.broadcast %120 : f32 to vector<1x128xf32>
    %127 = vector.broadcast %cst_34 : f32 to vector<1x128xf32>
    %128 = arith.select %125, %126, %127 : vector<1x128xi1>, vector<1x128xf32>
    %129 = vector.broadcast %115 : f32 to vector<1x128xf32>
    %130 = arith.select %123, %129, %128 : vector<1x128xi1>, vector<1x128xf32>
    %c0_35 = arith.constant 0 : index
    %c0_36 = arith.constant 0 : index
    %131 = vector.load %arg4[%c0_35, %c0_36] : memref<1x128xf32, #tpu.memory_space<vmem>>, vector<1x128xf32>
    tpu.vector_store %arg4[%c0_35, %c0_36], %130 {strides = array<i32>} : memref<1x128xf32, #tpu.memory_space<vmem>>, vector<1x128xf32>,
    return
  }
}

</mosaic_0001>

<bundles_post_ra>
// kernel: scoring_loss_with_model_search.1
= control target key start
LH: loop header
LB: loop body
LE: loop exit
PB: predicated region body
PF: predicated region fallthrough
CT: control target
= control target key end

     0   :  { %9 = vsyncpa [#allocation3], 0  ;;  %s2808_s0 = inlined_call_operand.hbm [shape: f32[4,128], index: 0, kind: input, shape index: {}]   ;;  %s2809_s1 = inlined_call_operand.hbm [shape: f32[4,128], index: 1, kind: input, shape index: {}]   ;;  %s2810_s2 = inlined_call_operand.hbm [shape: f32[4,8,128], index: 2, kind: input, shape index: {}]   ;;  %s2811_s3 = inlined_call_operand.hbm [shape: f32[4,8,128], index: 3, kind: input, shape index: {}]   ;;  %s2812_s4 = inlined_call_operand.vmem [shape: f32[1,128], index: 4, kind: output, shape index: {}]  }
   0x1   :  { %10 = vsyncpa [#allocation5], 0  ;;  %s28_s17 = sshll.u32 %s2809_s1, 4  ;;  %s29_s17 = int_to_ptr.hbm [resolvable:$true] %s28_s17 }
   0x2   :  { %11 = vsyncpa [#allocation8], 0  ;;  %s1991_s18 = smov [#allocation4]   ;;  %s17_s22 = sshll.u32 %s2808_s0, 4  ;;  %s18_s22 = int_to_ptr.hbm [resolvable:$true] %s17_s22 }
   0x3   :  { %s30_s19 = sshll.u32 %s1991_s18, 4  ;;  %s1992_s23 = smov [#allocation2]   ;;  %s31_s19 = int_to_ptr.vmem [resolvable:$true] %s30_s19 }
   0x4   :  { %33 = dma.hbm_to_vmem [thread:$0]  %s29_s17, 64, %s31_s19, [#allocation5]  }
   0x5   :  { %s19_s24 = sshll.u32 %s1992_s23, 4  ;;  %s38_s27 = sshll.u32 %s2810_s2, 4  ;;  %s20_s24 = int_to_ptr.vmem [resolvable:$true] %s19_s24  ;;  %s39_s27 = int_to_ptr.hbm [resolvable:$true] %s38_s27 }
   0x6   :  { %22 = dma.hbm_to_vmem [thread:$0]  %s18_s22, 64, %s20_s24, [#allocation3]  }
   0x7   :  { %s1993_s1 = smov [#allocation6]   ;;  %s51_s5 = sshll.u32 %s2811_s3, 4  ;;  %s52_s5 = int_to_ptr.hbm [resolvable:$true] %s51_s5 }
   0x8   :  { %s40_s28 = sshll.u32 %s1993_s1, 4  ;;  %s1994_s6 = smov 128   ;;  %s41_s28 = int_to_ptr.vmem [resolvable:$true] %s40_s28 }
   0x9   :  { %s1995_s0 = smov 8   ;;  %s1996_s7 = smov [#allocation7]  }
   0xa   :  { %46 = dma.hbm_to_vmem [thread:$0]  %s39_s27, 512, %s41_s28, [#allocation5], %s1994_s6, %s1994_s6, %s1995_s0  }
   0xb   :  { %s53_s8 = sshll.u32 %s1996_s7, 4  ;;  %s54_s8 = int_to_ptr.vmem [resolvable:$true] %s53_s8 }
   0xc   :  { %59 = dma.hbm_to_vmem [thread:$0]  %s52_s5, 512, %s54_s8, [#allocation8], %s1994_s6, %s1994_s6, %s1995_s0  }
   0xd   :  { %1985 = dma.done.wait [#allocation3], 64  }
   0xe   :  { %1986 = vsyncadd [#allocation3], 4294967232 }
   0xf   :  { %1987 = dma.done.wait [#allocation5], 576  }
  0x10   :  { %1988 = vsyncadd [#allocation5], 4294966720 }
  0x11   :  { %1989 = dma.done.wait [#allocation8], 512  }
  0x12   :  { %1990 = vsyncadd [#allocation8], 4294966784  ;;  %v79_v0 = vld [vmem:[#allocation6 + $0x8] sm:$0xff]  ;;  %v78_v1 = vld [vmem:[#allocation6] sm:$0xff]  ;;  %vm105_vm0 = vcmask 1040384   ;;  %vm750_vm1 = vcmask 1041408  }
  0x13   :  { %v82_v2 = vld [vmem:[#allocation7] sm:$0xff]  ;;  %v765_v3 = vmul.f32 %v79_v0, %v79_v0  ;;  %v2042_v4 = vand.u32 4294901760, %v79_v0  ;;  %v763_v5 = vmul.f32 %v78_v1, %v78_v1  ;;  %v2044_v6 = vand.u32 4294901760, %v78_v1  ;;  %v83_v7 = vld [vmem:[#allocation7 + $0x8] sm:$0xff]  ;;  %v2046_v8 = vld [vmem:[#allocation2] sm:$0xf] }
  0x14   :  { %v2048_v9 = vand.u32 4294901760, %v82_v2  ;;  %v766_v10 = vmul.f32 %v83_v7, %v83_v7  ;;  %v2050_v11 = vand.u32 4294901760, %v83_v7  ;;  %v2052_v12 = vld [vmem:[#allocation4] sm:$0xf]  ;;  %v97_v15 = vperm.slane %v2046_v8, 0  ;;  %v2066_v19 = vld [vmem:[#allocation7 + $0x10] sm:$0xff] }
  0x15   :  { %775 = vadd.xlane.f32.xlu0 %v765_v3  ;;  %v2055_v13 = vsub.f32 %v79_v0, %v2042_v4  ;;  %771 = vadd.xlane.f32.xlu2 %v763_v5  ;;  %v158_v14 = vsub.f32 %v78_v1, %v2044_v6  ;;  %v94_v18 = vrot.slane %v2046_v8, 1  ;;  %v87_v23 = vrot.slane %v2052_v12, 1  ;;  %v80_v43 = vld [vmem:[#allocation6 + $0x10] sm:$0xff]  ;;  %v2093_v46 = vld [vmem:[#allocation7 + $0x18] sm:$0xff]  ;;  %s1998_s2 = smov 120  }
  0x16   :  { %125 = vmatpush.xpose.msra.mxu0 %v2048_v9  ;;  %v152_v16 = vsub.f32 %v82_v2, %v2048_v9  ;;  %209 = vmatpush.xpose.msra.mxu3 %v2048_v9  ;;  %v2063_v17 = vsub.f32 %v83_v7, %v2050_v11  ;;  %v106_v20 = vsel %vm105_vm0, %v2052_v12, %v97_v15  ;;  %v2076_v31 = vand.u32 4294901760, %v2066_v19  ;;  %v2110_v58 = vld [vmem:[#allocation6 + $0x18] sm:$0xff] }
  0x17   :  { %777 = vadd.xlane.f32.xlu1 %v766_v10  ;;  %v159_v21 = vand.u32 4294901760, %v158_v14  ;;  %v318_v22 = vand.u32 4294901760, %v2055_v13  ;;  %v746_v25 = vmul.f32 %v106_v20, %v106_v20  ;;  %v2072_v26 = vand.u32 4294901760, %v106_v20 }
  0x18   :  { %184 = vmatpush.xpose.msra.mxu2 %v152_v16  ;;  %v153_v24 = vand.u32 4294901760, %v152_v16  ;;  %v312_v27 = vand.u32 4294901760, %v2063_v17  ;;  %v764_v28 = vmul.f32 %v82_v2, %v82_v2  ;;  %v98_v30 = vperm.slane %v94_v18, 0 }
  0x19   :  { %v160_v29 = vsub.f32 %v158_v14, %v159_v21  ;;  %v751_v33 = vsel %vm750_vm1, %v746_v25, 0.0  ;;  %v129_v34 = vsub.f32 %v106_v20, %v2072_v26  ;;  %v319_v36 = vsub.f32 %v2055_v13, %v318_v22 }
  0x1a   :  { %v154_v32 = vsub.f32 %v152_v16, %v153_v24  ;;  %127 = vmatpush.xpose.msra.mxu0 %v2044_v6  ;;  %211 = vmatpush.xpose.msra.mxu3 %v2044_v6  ;;  %v313_v35 = vsub.f32 %v2063_v17, %v312_v27  ;;  %v107_v37 = vsel %vm105_vm0, %v87_v23, %v98_v30  ;;  %v88_v38 = vrot.slane %v2052_v12, 2 }
  0x1b   :  { %v95_v39 = vrot.slane %v2046_v8, 2  ;;  %v130_v41 = vand.u32 4294901760, %v129_v34  ;;  %v2091_v44 = vand.u32 4294901760, %v107_v37  ;;  %v161_v48 = vand.u32 4294901760, %v160_v29 }
  0x1c   :  { %v155_v40 = vand.u32 4294901760, %v154_v32  ;;  %187 = vmatpush.xpose.msra.mxu2 %v158_v14  ;;  %v314_v42 = vand.u32 4294901760, %v313_v35  ;;  %v747_v49 = vmul.f32 %v107_v37, %v107_v37  ;;  %v2097_v50 = vsub.f32 %v2066_v19, %v2076_v31 }
  0x1d   :  { %773 = vadd.xlane.f32.xlu2 %v764_v28  ;;  %752 = vadd.xlane.f32.xlu0 %v751_v33  ;;  %v99_v45 = vperm.slane %v95_v39, 0  ;;  %v131_v47 = vsub.f32 %v129_v34, %v130_v41  ;;  %v320_v51 = vand.u32 4294901760, %v319_v36  ;;  %v2100_v52 = vsub.f32 %v107_v37, %v2091_v44 }
  0x1e   :  { %236 = vmatpush.xpose.msrb.mxu0 %v153_v24  ;;  %156 = vmatpush.xpose.msra.mxu1 %v155_v40  ;;  %v2103_v54 = vand.u32 4294901760, %v80_v43  ;;  %v2107_v56 = vand.u32 4294901760, %v2093_v46  ;;  %v754_v59 = vsel %vm750_vm1, %v747_v49, 0.0  ;;  %v96_v61 = vrot.slane %v2046_v8, 3 }
  0x1f   :  { %215 = vmatmul.f32.vlgmr.msra.gmra.mxu3 %v130_v41  ;;  %190 = vmatmul.f32.vlgmr.msra.gmra.mxu2 %v129_v34  ;;  %v108_v53 = vsel %vm105_vm0, %v88_v38, %v99_v45  ;;  %v132_v55 = vand.u32 4294901760, %v131_v47  ;;  %v289_v57 = vand.u32 4294901760, %v2100_v52  ;;  %v471_v63 = vand.u32 4294901760, %v2097_v50 }
  0x20   :  { %315 = vmatpush.xpose.msrb.mxu3 %v314_v42  ;;  %284 = vmatpush.xpose.msrb.mxu2 %v2050_v11  ;;  %v748_v60 = vmul.f32 %v108_v53, %v108_v53  ;;  %v2120_v0 = vsub.f32 %v80_v43, %v2103_v54  ;;  %v2126_v1 = vsub.f32 %v2093_v46, %v2107_v56  ;;  %v89_v2 = vrot.slane %v2052_v12, 3 }
  0x21   :  { %133 = vmatmul.f32.vlgmr.msra.gmra.mxu0 %v132_v55  ;;  %v290_v62 = vsub.f32 %v2100_v52, %v289_v57  ;;  %v100_v3 = vperm.slane %v96_v61, 0  ;;  %v2130_v5 = vand.u32 4294901760, %v2110_v58  ;;  %v472_v10 = vsub.f32 %v2097_v50, %v471_v63 }
  0x22   :  { %240 = vmatpush.xpose.msrb.mxu0 %v159_v21  ;;  %162 = vmatpush.xpose.msra.mxu1 %v161_v48  ;;  %v757_v8 = vsel %vm750_vm1, %v748_v60, 0.0  ;;  %v477_v12 = vand.u32 4294901760, %v2120_v0  ;;  %v630_v15 = vand.u32 4294901760, %v2126_v1  ;;  %v770_v32 = vmul.f32 %v2093_v46, %v2093_v46 }
  0x23   :  { %v291_v7 = vand.u32 4294901760, %v290_v62  ;;  %v109_v14 = vsel %vm105_vm0, %v89_v2, %v100_v3  ;;  %v2148_v16 = vsub.f32 %v2110_v58, %v2130_v5  ;;  %758 = vadd.xlane.f32.xlu1 %v757_v8  ;;  %v473_v18 = vand.u32 4294901760, %v472_v10 }
  0x24   :  { %321 = vmatpush.xpose.msrb.mxu3 %v320_v51  ;;  %286 = vmatpush.xpose.msrb.mxu2 %v2042_v4  ;;  %v605_v20 = vand.u32 4294901760, %v109_v14  ;;  %v478_v21 = vsub.f32 %v2120_v0, %v477_v12  ;;  %v769_v35 = vmul.f32 %v2110_v58, %v2110_v58  ;;  %vm800_vm3 = vcmask 130112  }
  0x25   :  { %164 = vmatmul.f32.vlgmr.msra.gmra.mxu1 %v2072_v26  ;;  %755 = vadd.xlane.f32.xlu0 %v754_v59  ;;  %v636_v23 = vand.u32 4294901760, %v2148_v16  ;;  %vm1339_vm10 = vcmask 1042434   ;;  %vm1341_vm14 = vcmask 1043459  }
  0x26   :  { %261 = vmatpush.xpose.msrb.mxu1 %v2048_v9  ;;  %343 = vmatpush.xpose.msra.mxu0 %v2063_v17  ;;  %v2137_v9 = vand.u32 4294901760, %v108_v53  ;;  %v768_v17 = vmul.f32 %v2066_v19, %v2066_v19  ;;  %v606_v24 = vsub.f32 %v109_v14, %v605_v20 }
  0x27   :  { %323 = vmatmul.f32.vlgmr.msrb.gmra.mxu3 %v2091_v44  ;;  %292 = vmatmul.f32.vlgmr.msrb.gmra.mxu2 %v291_v7  ;;  %v637_v28 = vsub.f32 %v2148_v16, %v636_v23 }
  0x28   :  { %395 = vmatpush.xpose.msra.mxu2 %v312_v27  ;;  %420 = vmatpush.xpose.msra.mxu3 %v2050_v11  ;;  %v607_v29 = vand.u32 4294901760, %v606_v24 }
  0x29   :  { %242 = vmatmul.f32.vlgmr.msrb.gmra.mxu0 %v2072_v26  ;;  %v638_v30 = vand.u32 4294901760, %v637_v28 }
  0x2a   :  { %263 = vmatpush.xpose.msrb.mxu1 %v2044_v6  ;;  %346 = vmatpush.xpose.msra.mxu0 %v2055_v13  ;;  %v447_v6 = vsub.f32 %v108_v53, %v2137_v9  ;;  %v749_v13 = vmul.f32 %v109_v14, %v109_v14  ;;  %v608_v34 = vsub.f32 %v606_v24, %v607_v29 }
  0x2c   :  { %399 = vmatpush.xpose.msra.mxu2 %v318_v22  ;;  %422 = vmatpush.xpose.msra.mxu3 %v2042_v4  ;;  %v631_v22 = vsub.f32 %v2126_v1, %v630_v15  ;;  %v448_v19 = vand.u32 4294901760, %v447_v6  ;;  %v760_v25 = vsel %vm750_vm1, %v749_v13, 0.0  ;;  %v609_v36 = vand.u32 4294901760, %v608_v34 }
  0x2d   :  { %265 = vmatmul.f32.vlgmr.msrb.gmra.mxu1 %v2072_v26  ;;  %781 = vadd.xlane.f32.xlu0 %v768_v17 }
  0x2e   :  { %368 = vmatpush.xpose.msra.mxu1 %v2050_v11  ;;  %v767_v11 = vmul.f32 %v80_v43, %v80_v43  ;;  %443 = vmatpush.xpose.msrb.mxu0 %v2076_v31  ;;  %v632_v27 = vand.u32 4294901760, %v631_v22  ;;  %v449_v26 = vsub.f32 %v447_v6, %v448_v19  ;;  %v1997_v43 = vmov 0  }
  0x2f   :  { %401 = vmatmul.f32.vlgmr.msra.gmra.mxu2 %v2091_v44  ;;  %424 = vmatmul.f32.vlgmr.msra.gmra.mxu3 %v2091_v44 }
  0x30   :  { %502 = vmatpush.xpose.msrb.mxu2 %v2097_v50  ;;  %527 = vmatpush.xpose.msrb.mxu3 %v2076_v31  ;;  %v450_v33 = vand.u32 4294901760, %v449_v26 }
  0x31   :  { %779 = vadd.xlane.f32.xlu2 %v767_v11  ;;  %349 = vmatmul.f32.vlgmr.msra.gmra.mxu0 %v2100_v52 }
  0x32   :  { %370 = vmatpush.xpose.msra.mxu1 %v2042_v4  ;;  %v479_v4 = vand.u32 4294901760, %v478_v21  ;;  %445 = vmatpush.xpose.msrb.mxu0 %v2103_v54 }
  0x33   :  { %761 = vadd.xlane.f32.xlu1 %v760_v25 }
  0x34   :  { %505 = vmatpush.xpose.msrb.mxu2 %v2120_v0  ;;  %529 = vmatpush.xpose.msrb.mxu3 %v2103_v54 }
  0x35   :  { %374 = vmatmul.f32.vlgmr.msra.gmra.mxu1 %v289_v57 }
  0x36   :  { %474 = vmatpush.xpose.msrb.mxu1 %v473_v18  ;;  %554 = vmatpush.xpose.msra.mxu0 %v471_v63 }
  0x37   :  { %508 = vmatmul.f32.vlgmr.msrb.gmra.mxu2 %v447_v6  ;;  %533 = vmatmul.f32.vlgmr.msrb.gmra.mxu3 %v448_v19 }
  0x38   :  { %602 = vmatpush.xpose.msra.mxu2 %v2107_v56  ;;  %633 = vmatpush.xpose.msra.mxu3 %v632_v27 }
  0x39   :  { %785 = vadd.xlane.f32.xlu2 %v770_v32  ;;  %451 = vmatmul.f32.vlgmr.msrb.gmra.mxu0 %v450_v33 }
  0x3a   :  { %480 = vmatpush.xpose.msrb.mxu1 %v479_v4  ;;  %558 = vmatpush.xpose.msra.mxu0 %v477_v12 }
  0x3b   :  { %783 = vadd.xlane.f32.xlu1 %v769_v35 }
  0x3c   :  { %604 = vmatpush.xpose.msra.mxu2 %v2130_v5  ;;  %639 = vmatpush.xpose.msra.mxu3 %v638_v30 }
  0x3d   :  { %482 = vmatmul.f32.vlgmr.msrb.gmra.mxu1 %v2137_v9 }
  0x3e   :  { %579 = vmatpush.xpose.msra.mxu1 %v2076_v31  ;;  %661 = vmatpush.xpose.msrb.mxu0 %v2126_v1  ;;  %v795_v31 = vlaneseq }
  0x3f   :  { %610 = vmatmul.f32.vlgmr.msra.gmra.mxu2 %v609_v36  ;;  %641 = vmatmul.f32.vlgmr.msra.gmra.mxu3 %v605_v20 }
  0x40   :  { %713 = vmatpush.xpose.msrb.mxu2 %v630_v15  ;;  %738 = vmatpush.xpose.msrb.mxu3 %v2107_v56  ;;  %v2193_v37 = vand.u32 127, %v795_v31  ;;  %v2195_v38 = vshrl.u32 %v795_v31, 7 }
  0x41   :  { %560 = vmatmul.f32.vlgmr.msra.gmra.mxu0 %v2137_v9 }
  0x42   :  { %581 = vmatpush.xpose.msra.mxu1 %v2103_v54  ;;  %664 = vmatpush.xpose.msrb.mxu0 %v2148_v16  ;;  %v2199_v41 = vadd.s32 8, %v2195_v38  ;;  %vm2203_vm2 = vcmp.lt.s32.totalorder %v2193_v37, %v2195_v38  ;;  %v2214_v45 = vadd.s32 4294967288, %v2193_v37 }
  0x43   :  { %1860 = vset.pattern.permute.xlu0 %v2195_v38  ;;  %v1006_v44 = vsel %vm2203_vm2, 1, %v1997_v43 }
  0x44   :  { %717 = vmatpush.xpose.msrb.mxu2 %v636_v23  ;;  %740 = vmatpush.xpose.msrb.mxu3 %v2130_v5 }
  0x45   :  { %583 = vmatmul.f32.vlgmr.msra.gmra.mxu1 %v2137_v9  ;;  %1863 = vset.pattern.permute.xlu2 %v2199_v41 }
  0x46   :  { %686 = vmatpush.xpose.msrb.mxu1 %v2107_v56  ;;  %1861 = vset.pattern.permute.xlu1 %v2199_v41 }
  0x47   :  { %719 = vmatmul.f32.vlgmr.msrb.gmra.mxu2 %v605_v20  ;;  %742 = vmatmul.f32.vlgmr.msrb.gmra.mxu3 %v605_v20 }
  0x49   :  { %667 = vmatmul.f32.vlgmr.msrb.gmra.mxu0 %v606_v24 }
  0x4a   :  { %688 = vmatpush.xpose.msrb.mxu1 %v2130_v5 }
  0x4d   :  { %692 = vmatmul.f32.vlgmr.msrb.gmra.mxu1 %v607_v29 }
  0x51   :  { %1007 = vrot.lane.b32.xlu2 %v1006_v44, %s1995_s0 }
  0x88   :  { %v776_v39 = vpop.xlane.xlu0 %775  ;;  %v772_v40 = vpop.xlane.xlu2 %771 }
  0x89   :  { %v797_v48 = vperm.slane %v772_v40, %v2193_v37  ;;  %v802_v52 = vperm.slane %v776_v39, %v2193_v37 }
  0x8a   :  { %v778_v49 = vpop.xlane.xlu1 %777 }
  0x8b   :  { %v803_v53 = vperm.slane %v778_v49, %v2214_v45 }
  0x8d   :  { %v804_v56 = vsel %vm800_vm3, %v803_v53, %v802_v52 }
  0x90   :  { %v774_v46 = vpop.xlane.xlu2 %773  ;;  %v753_v47 = vpop.xlane.xlu0 %752 }
  0x91   :  { %v799_v50 = vperm.slane %v774_v46, %v2214_v45 }
  0x93   :  { %v801_v51 = vsel %vm800_vm3, %v799_v50, %v797_v48 }
  0x94   :  { %v816_v54 = vmul.f32 %v801_v51, %v753_v47 }
  0x96   :  { %v820_v55 = vmax.f32 %v816_v54, 1e-16  ;;  %v759_v60 = vpop.xlane.xlu1 %758 }
  0x98   :  { %1875 = vrsqrt.f32 %v820_v55  ;;  %v756_v57 = vpop.xlane.xlu0 %755  ;;  %vm830_vm5 = vweird.f32 %v820_v55 }
  0x99   :  { %v817_v58 = vmul.f32 %v804_v56, %v756_v57 }
  0x9b   :  { %v2222_v59 = vmax.f32 %v817_v58, 1e-16 }
  0x9d   :  { %1877 = vrsqrt.f32 %v2222_v59  ;;  %vm840_vm8 = vweird.f32 %v2222_v59 }
  0x9e   :  { %v1876_v61 = vpop.eup %1875  ;;  %v134_v63 = vpop.f32.mrf.mxu0 }
  0x9f   :  { %v825_v62 = vmul.f32 %v1876_v61, %v820_v55  ;;  %vm831_vm4 = vweird.f32 %v1876_v61 }
  0xa0   :  { %v782_v12 = vpop.xlane.xlu0 %781  ;;  %vm832_vm6 = vmor %vm830_vm5, %vm831_vm4  ;;  %vm1343_vm4 = vcmask 1044484  }
  0xa1   :  { %v826_v0 = vmul.f32 %v1876_v61, %v825_v62  ;;  %v806_v15 = vperm.slane %v782_v12, %v2214_v45 }
  0xa2   :  { %v216_v1 = vpop.f32.mrf.mxu3  ;;  %v165_v3 = vpop.f32.mrf.mxu1 }
  0xa3   :  { %v191_v5 = vpop.f32.mrf.mxu2  ;;  %v1878_v8 = vpop.eup %1877  ;;  %v827_v9 = vmul.f32 0.5, %v826_v0  ;;  %v166_v10 = vadd.f32 %v165_v3, %v134_v63 }
  0xa4   :  { %v780_v2 = vpop.xlane.xlu2 %779  ;;  %v835_v14 = vmul.f32 %v1878_v8, %v2222_v59  ;;  %vm841_vm7 = vweird.f32 %v1878_v8 }
  0xa5   :  { %v805_v7 = vperm.slane %v780_v2, %v2193_v37  ;;  %v828_v16 = vsub.f32 1.5, %v827_v9  ;;  %v192_v6 = vadd.f32 %v191_v5, %v166_v10  ;;  %vm842_vm9 = vmor %vm840_vm8, %vm841_vm7 }
  0xa6   :  { %v762_v17 = vpop.xlane.xlu1 %761  ;;  %v243_v20 = vpop.f32.mrf.mxu0  ;;  %v836_v13 = vmul.f32 %v1878_v8, %v835_v14 }
  0xa7   :  { %v807_v11 = vsel %vm800_vm3, %v806_v15, %v805_v7  ;;  %v217_v18 = vadd.f32 %v216_v1, %v192_v6  ;;  %v829_v22 = vmul.f32 %v1876_v61, %v828_v16 }
  0xa8   :  { %v818_v21 = vmul.f32 %v807_v11, %v759_v60  ;;  %v837_v28 = vmul.f32 0.5, %v836_v13 }
  0xa9   :  { %v244_v23 = vadd.f32 %v243_v20, %v217_v18  ;;  %v833_v26 = vsel %vm832_vm6, %v1876_v61, %v829_v22 }
  0xaa   :  { %v2229_v19 = vmax.f32 %v818_v21, 1e-16  ;;  %v324_v24 = vpop.f32.mrf.mxu3  ;;  %v266_v4 = vpop.f32.mrf.mxu1  ;;  %v838_v39 = vsub.f32 1.5, %v837_v28 }
  0xab   :  { %v293_v25 = vpop.f32.mrf.mxu2  ;;  %v267_v27 = vadd.f32 %v266_v4, %v244_v23 }
  0xac   :  { %1879 = vrsqrt.f32 %v2229_v19  ;;  %v786_v29 = vpop.xlane.xlu2 %785  ;;  %v325_v32 = vadd.f32 %v324_v24, %v293_v25  ;;  %v839_v52 = vmul.f32 %v1878_v8, %v838_v39  ;;  %vm850_vm11 = vweird.f32 %v2229_v19 }
  0xad   :  { %v864_v30 = vmul.f32 %v833_v26, %v267_v27  ;;  %v809_v33 = vperm.slane %v786_v29, %v2214_v45 }
  0xae   :  { %v784_v34 = vpop.xlane.xlu1 %783  ;;  %v350_v36 = vpop.f32.mrf.mxu0  ;;  %v843_v58 = vsel %vm842_vm9, %v1878_v8, %v839_v52 }
  0xaf   :  { %v2233_v35 = vperm.slane %v864_v30, 0  ;;  %v808_v31 = vperm.slane %v784_v34, %v2193_v37  ;;  %v351_v44 = vadd.f32 %v350_v36, %v325_v32 }
  0xb1   :  { %1424 = vperm.xlu2 %1863, %v2233_v35   ;;  %978 = vperm.xlu1 %1861, %v2233_v35   ;;  %v810_v46 = vsel %vm800_vm3, %v809_v33, %v808_v31 }
  0xb2   :  { %v1880_v40 = vpop.eup %1879  ;;  %873 = vperm.xlu0 %1860, %v2233_v35   ;;  %v375_v45 = vpop.f32.mrf.mxu1  ;;  %v819_v49 = vmul.f32 %v810_v46, %v762_v17 }
  0xb3   :  { %v845_v47 = vmul.f32 %v1880_v40, %v2229_v19  ;;  %v402_v48 = vpop.f32.mrf.mxu2  ;;  %v376_v50 = vadd.f32 %v375_v45, %v351_v44  ;;  %v425_v51 = vpop.f32.mrf.mxu3  ;;  %vm851_vm12 = vweird.f32 %v1880_v40 }
  0xb4   :  { %v823_v53 = vmax.f32 %v819_v49, 1e-16  ;;  %vm852_vm13 = vmor %vm850_vm11, %vm851_vm12  ;;  %v2278_v46 = vpop.permute.xlu2 %1007 }
  0xb5   :  { %v846_v54 = vmul.f32 %v1880_v40, %v845_v47  ;;  %v403_v55 = vadd.f32 %v402_v48, %v376_v50  ;;  %vm1009_vm5 = vcmp.ne.s32.totalorder %v2278_v46, 0 }
  0xb6   :  { %1881 = vrsqrt.f32 %v823_v53  ;;  %v452_v57 = vpop.f32.mrf.mxu0  ;;  %vm860_vm15 = vweird.f32 %v823_v53 }
  0xb7   :  { %v426_v56 = vadd.f32 %v425_v51, %v403_v55  ;;  %v847_v60 = vmul.f32 0.5, %v846_v54 }
  0xb9   :  { %v865_v61 = vmul.f32 %v843_v58, %v426_v56  ;;  %1862 = vset.pattern.permute.xlu1 %v2195_v38  ;;  %v848_v5 = vsub.f32 1.5, %v847_v60 }
  0xba   :  { %1865 = vset.pattern.permute.xlu0 %v2199_v41  ;;  %v483_v62 = vpop.f32.mrf.mxu1 }
  0xbb   :  { %v509_v63 = vpop.f32.mrf.mxu2  ;;  %v2244_v0 = vperm.slane %v865_v61, 0  ;;  %v1713_v1 = vrot.slane %v865_v61, 7  ;;  %v484_v2 = vadd.f32 %v483_v62, %v452_v57  ;;  %v534_v3 = vpop.f32.mrf.mxu3  ;;  %v849_v15 = vmul.f32 %v1880_v40, %v848_v5 }
  0xbc   :  { %v1882_v59 = vpop.eup %1881 }
  0xbd   :  { %v855_v7 = vmul.f32 %v1882_v59, %v823_v53  ;;  %v510_v9 = vadd.f32 %v509_v63, %v484_v2  ;;  %984 = vperm.xlu2 %1863, %v2244_v0   ;;  %v1714_v8 = vsel %vm1339_vm10, %v1713_v1, %v864_v30  ;;  %v853_v21 = vsel %vm852_vm13, %v1880_v40, %v849_v15 }
  0xbe   :  { %v561_v12 = vpop.f32.mrf.mxu0  ;;  %vm861_vm0 = vweird.f32 %v1882_v59 }
  0xbf   :  { %v535_v10 = vadd.f32 %v534_v3, %v510_v9  ;;  %v856_v14 = vmul.f32 %v1882_v59, %v855_v7  ;;  %vm862_vm1 = vmor %vm860_vm15, %vm861_vm0  ;;  %vm2813_vm15 = vcmask 64512  }
  0xc1   :  { %v562_v16 = vadd.f32 %v561_v12, %v535_v10  ;;  %1122 = vperm.xlu1 %1862, %v2233_v35   ;;  %v857_v17 = vmul.f32 0.5, %v856_v14 }
  0xc2   :  { %1430 = vperm.xlu0 %1865, %v2244_v0   ;;  %v584_v6 = vpop.f32.mrf.mxu1 }
  0xc3   :  { %v611_v11 = vpop.f32.mrf.mxu2  ;;  %v585_v18 = vadd.f32 %v584_v6, %v562_v16  ;;  %v642_v20 = vpop.f32.mrf.mxu3  ;;  %v858_v23 = vsub.f32 1.5, %v857_v17 }
  0xc4   :  { %v643_v13 = vadd.f32 %v642_v20, %v611_v11 }
  0xc5   :  { %v866_v22 = vmul.f32 %v853_v21, %v585_v18  ;;  %1864 = vset.pattern.permute.xlu2 %v2195_v38  ;;  %v859_v29 = vmul.f32 %v1882_v59, %v858_v23 }
  0xc6   :  { %v668_v4 = vpop.f32.mrf.mxu0 }
  0xc7   :  { %v2252_v19 = vperm.slane %v866_v22, 0  ;;  %v1715_v24 = vrot.slane %v866_v22, 6  ;;  %v669_v25 = vadd.f32 %v668_v4, %v643_v13  ;;  %v863_v34 = vsel %vm862_vm1, %v1882_v59, %v859_v29 }
  0xc9   :  { %880 = vperm.xlu1 %1862, %v2244_v0   ;;  %v1716_v27 = vsel %vm1341_vm14, %v1715_v24, %v1714_v8 }
  0xca   :  { %990 = vperm.xlu0 %1865, %v2252_v19   ;;  %v693_v28 = vpop.f32.mrf.mxu1 }
  0xcb   :  { %v720_v26 = vpop.f32.mrf.mxu2  ;;  %v694_v30 = vadd.f32 %v693_v28, %v669_v25  ;;  %v743_v32 = vpop.f32.mrf.mxu3 }
  0xcd   :  { %v721_v33 = vadd.f32 %v720_v26, %v694_v30  ;;  %1128 = vperm.xlu2 %1864, %v2244_v0  }
  0xcf   :  { %v744_v36 = vadd.f32 %v743_v32, %v721_v33 }
  0xd1   :  { %v867_v31 = vmul.f32 %v863_v34, %v744_v36  ;;  %1869 = vset.pattern.permute.xlu1 %v2199_v41 }
  0xd2   :  { %1866 = vset.pattern.permute.xlu0 %v2195_v38 }
  0xd3   :  { %v1717_v39 = vrot.slane %v867_v31, 5  ;;  %v2260_v40 = vperm.slane %v867_v31, 0 }
  0xd5   :  { %887 = vperm.xlu2 %1864, %v2252_v19   ;;  %v2264_v44 = vsel %vm1343_vm4, %v1717_v39, %v1716_v27 }
  0xd9   :  { %996 = vperm.xlu1 %1869, %v2260_v40  }
  0xda   :  { %1134 = vperm.xlu0 %1866, %v2252_v19  }
  0xdd   :  { %1867 = vset.pattern.permute.xlu2 %v2199_v41 }
  0xe1   :  { %1870 = vset.pattern.permute.xlu1 %v2195_v38 }
  0xe2   :  { %1874 = vset.pattern.permute.xlu0 %v1997_v43 }
  0xe5   :  { %1436 = vperm.xlu2 %1867, %v2252_v19  }
  0xe9   :  { %1140 = vperm.xlu1 %1870, %v2260_v40  }
  0xed   :  { %1868 = vset.pattern.permute.xlu2 %v2195_v38 }
  0xf1   :  { %1873 = vset.pattern.permute.xlu1 %v1997_v43 }
  0xf5   :  { %894 = vperm.xlu2 %1868, %v2260_v40  }
  0xfd   :  { %1871 = vset.pattern.permute.xlu2 %v2199_v41 }
 0x105   :  { %1442 = vperm.xlu2 %1871, %v2260_v40  }
 0x10b   :  { %v2281_v47 = vpop.permute.xlu2 %1424 }
 0x10d   :  { %1872 = vset.pattern.permute.xlu2 %v1997_v43 }
 0x117   :  { %v985_v45 = vpop.permute.xlu2 %984 }
 0x123   :  { %v979_v48 = vpop.permute.xlu1 %978 }
 0x124   :  { %vm998_vm6 = vcmp.lt.f32.partialorder %v2233_v35, %v979_v48  ;;  %vm1002_vm7 = vcmp.eq.f32.partialorder %v2233_v35, %v979_v48  ;;  %v874_v49 = vpop.permute.xlu0 %873 }
 0x125   :  { %vm1010_vm8 = vmand %vm1002_vm7, %vm1009_vm5  ;;  %vm896_vm9 = vcmp.gt.f32.partialorder %v2233_v35, %v874_v49  ;;  %vm902_vm11 = vcmp.eq.f32.partialorder %v2233_v35, %v874_v49 }
 0x126   :  { %vm1014_vm12 = vmor %vm998_vm6, %vm1010_vm8 }
 0x127   :  { %vm909_vm13 = vmand %vm902_vm11, %vm2203_vm2  ;;  %v2292_v41 = vpop.permute.xlu2 %1128  ;;  %v1018_v52 = vsel %vm1014_vm12, 1, %v1997_v43  ;;  %vm999_vm11 = vcmp.lt.f32.partialorder %v2244_v0, %v985_v45 }
 0x128   :  { %vm913_vm0 = vmor %vm896_vm9, %vm909_vm13  ;;  %v1022_v35 = vsel %vm800_vm3, %v1018_v52, 0  ;;  %vm1003_vm9 = vcmp.eq.f32.partialorder %v2244_v0, %v985_v45 }
 0x129   :  { %v917_v50 = vsel %vm913_vm0, 1, %v1997_v43  ;;  %v1023_v58 = vand.u32 65535, %v1022_v35  ;;  %v1024_v60 = vshrl.u32 %v1022_v35, 16  ;;  %vm1011_vm12 = vmand %vm1003_vm9, %vm1009_vm5  ;;  %v2357_v35 = vperm.slane %v2195_v38, 0 }
 0x12a   :  { %v922_v51 = vsel %vm2813_vm15, %v917_v50, 0  ;;  %vm2312_vm13 = vmor %vm999_vm11, %vm1011_vm12 }
 0x12b   :  { %v923_v53 = vand.u32 65535, %v922_v51  ;;  %v924_v54 = vshrl.u32 %v922_v51, 16  ;;  %v1025_v1 = vcvt.s32.f32 %v1023_v58  ;;  %v1026_v2 = vcvt.s32.f32 %v1024_v60 }
 0x12d   :  { %v925_v55 = vcvt.s32.f32 %v923_v53  ;;  %v926_v56 = vcvt.s32.f32 %v924_v54  ;;  %v2351_v53 = vperm.slane %v2195_v38, 5 }
 0x12f   :  { %927 = vadd.xlane.f32.xlu1 %v925_v55  ;;  %929 = vadd.xlane.f32.xlu2 %v926_v56  ;;  %v888_v57 = vpop.permute.xlu2 %887  ;;  %v2354_v56 = vperm.slane %v2195_v38, 1 }
 0x130   :  { %vm898_vm1 = vcmp.gt.f32.partialorder %v2252_v19, %v888_v57  ;;  %vm904_vm6 = vcmp.eq.f32.partialorder %v2252_v19, %v888_v57 }
 0x131   :  { %vm911_vm7 = vmand %vm904_vm6, %vm2203_vm2 }
 0x132   :  { %vm915_vm8 = vmor %vm898_vm1, %vm911_vm7 }
 0x133   :  { %v919_v61 = vsel %vm915_vm8, 1, %v1997_v43  ;;  %v2303_v62 = vpop.permute.xlu1 %1122 }
 0x134   :  { %v2305_v63 = vpop.permute.xlu0 %1430  ;;  %v948_v3 = vsel %vm2813_vm15, %v919_v61, 0 }
 0x135   :  { %v949_v59 = vand.u32 65535, %v948_v3  ;;  %v950_v27 = vshrl.u32 %v948_v3, 16 }
 0x137   :  { %1027 = vadd.xlane.f32.xlu1 %v1025_v1  ;;  %1029 = vadd.xlane.f32.xlu2 %v1026_v2  ;;  %v951_v8 = vcvt.s32.f32 %v949_v59  ;;  %v952_v30 = vcvt.s32.f32 %v950_v27  ;;  %v2366_v59 = vperm.slane %v2195_v38, 3 }
 0x13b   :  { %v881_v5 = vpop.permute.xlu1 %880 }
 0x13c   :  { %v991_v9 = vpop.permute.xlu0 %990  ;;  %vm903_vm0 = vcmp.eq.f32.partialorder %v2244_v0, %v881_v5  ;;  %vm897_vm7 = vcmp.gt.f32.partialorder %v2244_v0, %v881_v5  ;;  %v1019_v0 = vsel %vm2312_vm13, 1, %v1997_v43  ;;  %v2369_v5 = vperm.slane %v2195_v38, 2 }
 0x13d   :  { %vm1000_vm1 = vcmp.lt.f32.partialorder %v2252_v19, %v991_v9  ;;  %vm1004_vm6 = vcmp.eq.f32.partialorder %v2252_v19, %v991_v9  ;;  %vm910_vm8 = vmand %vm903_vm0, %vm2203_vm2  ;;  %v1035_v21 = vsel %vm800_vm3, %v1019_v0, 0  ;;  %v2386_v0 = vperm.slane %v2195_v38, 6 }
 0x13e   :  { %vm1012_vm9 = vmand %vm1004_vm6, %vm1009_vm5  ;;  %v1037_v22 = vshrl.u32 %v1035_v21, 16  ;;  %v1036_v23 = vand.u32 65535, %v1035_v21 }
 0x13f   :  { %vm1016_vm11 = vmor %vm1000_vm1, %vm1012_vm9  ;;  %953 = vadd.xlane.f32.xlu2 %v951_v8  ;;  %v2332_v13 = vpop.permute.xlu2 %1436 }
 0x140   :  { %v1020_v10 = vsel %vm1016_vm11, 1, %v1997_v43  ;;  %vm914_vm12 = vmor %vm897_vm7, %vm910_vm8  ;;  %v1039_v24 = vcvt.s32.f32 %v1037_v22  ;;  %v1038_v4 = vcvt.s32.f32 %v1036_v23 }
 0x141   :  { %v918_v12 = vsel %vm914_vm12, 1, %v1997_v43  ;;  %v1048_v14 = vsel %vm800_vm3, %v1020_v10, 0 }
 0x142   :  { %v935_v15 = vsel %vm2813_vm15, %v918_v12, 0  ;;  %v1049_v16 = vand.u32 65535, %v1048_v14  ;;  %v1050_v42 = vshrl.u32 %v1048_v14, 16 }
 0x143   :  { %v937_v6 = vshrl.u32 %v935_v15, 16  ;;  %v936_v11 = vand.u32 65535, %v935_v15  ;;  %v2382_v15 = vperm.slane %v2195_v38, 7 }
 0x144   :  { %v1051_v17 = vcvt.s32.f32 %v1049_v16  ;;  %v1052_v46 = vcvt.s32.f32 %v1050_v42 }
 0x145   :  { %v939_v18 = vcvt.s32.f32 %v937_v6  ;;  %v938_v20 = vcvt.s32.f32 %v936_v11  ;;  %v2389_v6 = vperm.slane %v2195_v38, 4 }
 0x147   :  { %942 = vadd.xlane.f32.xlu1 %v939_v18  ;;  %940 = vadd.xlane.f32.xlu0 %v938_v20 }
 0x148   :  { %1053 = vadd.xlane.f32.xlu2 %v1051_v17 }
 0x14b   :  { %v997_v19 = vpop.permute.xlu1 %996 }
 0x14c   :  { %vm1005_vm0 = vcmp.eq.f32.partialorder %v2260_v40, %v997_v19  ;;  %vm1001_vm1 = vcmp.lt.f32.partialorder %v2260_v40, %v997_v19  ;;  %v2377_v10 = vpop.permute.xlu0 %1134 }
 0x14d   :  { %vm1013_vm13 = vmand %vm1005_vm0, %vm1009_vm5 }
 0x14e   :  { %vm1017_vm6 = vmor %vm1001_vm1, %vm1013_vm13 }
 0x14f   :  { %1042 = vadd.xlane.f32.xlu1 %v1039_v24  ;;  %1040 = vadd.xlane.f32.xlu0 %v1038_v4  ;;  %v895_v25 = vpop.permute.xlu2 %894  ;;  %v1021_v29 = vsel %vm1017_vm6, 1, %v1997_v43 }
 0x150   :  { %vm899_vm7 = vcmp.gt.f32.partialorder %v2260_v40, %v895_v25  ;;  %vm905_vm8 = vcmp.eq.f32.partialorder %v2260_v40, %v895_v25  ;;  %v1061_v31 = vsel %vm800_vm3, %v1021_v29, 0 }
 0x151   :  { %vm912_vm9 = vmand %vm905_vm8, %vm2203_vm2  ;;  %v1063_v39 = vshrl.u32 %v1061_v31, 16  ;;  %v1062_v40 = vand.u32 65535, %v1061_v31 }
 0x152   :  { %vm916_vm11 = vmor %vm899_vm7, %vm912_vm9 }
 0x153   :  { %v920_v28 = vsel %vm916_vm11, 1, %v1997_v43  ;;  %v1065_v45 = vcvt.s32.f32 %v1063_v39  ;;  %v1064_v48 = vcvt.s32.f32 %v1062_v40 }
 0x154   :  { %v961_v26 = vsel %vm2813_vm15, %v920_v28, 0 }
 0x155   :  { %v962_v32 = vand.u32 65535, %v961_v26  ;;  %v963_v33 = vshrl.u32 %v961_v26, 16 }
 0x157   :  { %955 = vadd.xlane.f32.xlu1 %v952_v30  ;;  %v964_v34 = vcvt.s32.f32 %v962_v32  ;;  %v965_v36 = vcvt.s32.f32 %v963_v33 }
 0x159   :  { %966 = vadd.xlane.f32.xlu2 %v964_v34  ;;  %968 = vadd.xlane.f32.xlu0 %v965_v36 }
 0x15b   :  { %v2346_v43 = vpop.permute.xlu1 %1140 }
 0x15f   :  { %1055 = vadd.xlane.f32.xlu1 %v1052_v46  ;;  %v2348_v49 = vpop.permute.xlu2 %1442 }
 0x161   :  { %1068 = vadd.xlane.f32.xlu0 %v1065_v45  ;;  %1066 = vadd.xlane.f32.xlu2 %v1064_v48 }
 0x1a2   :  { %v928_v50 = vpop.xlane.xlu1 %927  ;;  %v930_v51 = vpop.xlane.xlu2 %929 }
 0x1a3   :  { %v932_v52 = vcvt.f32.s32 %v930_v51  ;;  %v931_v54 = vcvt.f32.s32 %v928_v50 }
 0x1a5   :  { %v933_v55 = vshll.u32 %v932_v52, 16 }
 0x1a7   :  { %v934_v57 = vadd.s32 %v933_v55, %v931_v54 }
 0x1a9   :  { %vm1087_vm2 = vcmp.eq.s32.totalorder %v934_v57, %v2351_v53  ;;  %vm1083_vm3 = vcmp.eq.s32.totalorder %v934_v57, %v2354_v56  ;;  %vm1082_vm5 = vcmp.eq.s32.totalorder %v934_v57, %v2357_v35  ;;  %vm1085_vm12 = vcmp.eq.s32.totalorder %v934_v57, %v2366_v59 }
 0x1aa   :  { %v1028_v58 = vpop.xlane.xlu1 %1027  ;;  %v1030_v60 = vpop.xlane.xlu2 %1029  ;;  %v1151_v61 = vsel %vm1087_vm2, %v2303_v62, 0.0  ;;  %v1147_v1 = vsel %vm1083_vm3, %v2303_v62, 0.0  ;;  %v1146_v2 = vsel %vm1082_vm5, %v2303_v62, 0.0  ;;  %vm1084_vm0 = vcmp.eq.s32.totalorder %v934_v57, %v2369_v5 }
 0x1ab   :  { %v1032_v3 = vcvt.f32.s32 %v1030_v60  ;;  %1226 = vperm.xlu0 %1874, %v1151_v61   ;;  %1214 = vperm.xlu1 %1873, %v1147_v1   ;;  %v1031_v7 = vcvt.f32.s32 %v1028_v58  ;;  %v1149_v12 = vsel %vm1085_vm12, %v2303_v62, 0.0  ;;  %v1148_v16 = vsel %vm1084_vm0, %v2303_v62, 0.0 }
 0x1ac   :  { %1211 = vperm.xlu2 %1872, %v1146_v2   ;;  %vm1088_vm6 = vcmp.eq.s32.totalorder %v934_v57, %v2386_v0  ;;  %vm1086_vm7 = vcmp.eq.s32.totalorder %v934_v57, %v2389_v6  ;;  %vm1089_vm9 = vcmp.eq.s32.totalorder %v934_v57, %v2382_v15 }
 0x1ad   :  { %v1033_v9 = vshll.u32 %v1032_v3, 16  ;;  %v1152_v20 = vsel %vm1088_vm6, %v2303_v62, 0.0  ;;  %v1150_v22 = vsel %vm1086_vm7, %v2303_v62, 0.0  ;;  %v1153_v27 = vsel %vm1089_vm9, %v2303_v62, 0.0 }
 0x1af   :  { %v2371_v8 = vadd.s32 %v1033_v9, %v1031_v7 }
 0x1b1   :  { %vm1393_vm1 = vcmp.eq.s32.totalorder %v2371_v8, %v2351_v53  ;;  %vm1395_vm13 = vcmp.eq.s32.totalorder %v2371_v8, %v2382_v15  ;;  %vm1392_vm8 = vcmp.eq.s32.totalorder %v2371_v8, %v2389_v6  ;;  %vm1394_vm3 = vcmp.eq.s32.totalorder %v2371_v8, %v2386_v0 }
 0x1b2   :  { %v1453_v14 = vsel %vm1393_vm1, %v2281_v47, 0.0  ;;  %v954_v11 = vpop.xlane.xlu2 %953  ;;  %v1452_v25 = vsel %vm1392_vm8, %v2281_v47, 0.0  ;;  %vm1388_vm5 = vcmp.eq.s32.totalorder %v2371_v8, %v2357_v35  ;;  %v1454_v32 = vsel %vm1394_vm3, %v2281_v47, 0.0 }
 0x1b3   :  { %1220 = vperm.xlu1 %1873, %v1149_v12   ;;  %1528 = vperm.xlu0 %1874, %v1453_v14   ;;  %v1448_v33 = vsel %vm1388_vm5, %v2281_v47, 0.0  ;;  %v957_v31 = vcvt.f32.s32 %v954_v11  ;;  %vm1389_vm12 = vcmp.eq.s32.totalorder %v2371_v8, %v2354_v56  ;;  %vm1390_vm6 = vcmp.eq.s32.totalorder %v2371_v8, %v2369_v5 }
 0x1b4   :  { %1217 = vperm.xlu2 %1872, %v1148_v16   ;;  %v1449_v50 = vsel %vm1389_vm12, %v2281_v47, 0.0 }
 0x1ba   :  { %v941_v17 = vpop.xlane.xlu0 %940  ;;  %v943_v18 = vpop.xlane.xlu1 %942 }
 0x1bb   :  { %v945_v21 = vcvt.f32.s32 %v943_v18  ;;  %1229 = vperm.xlu1 %1873, %v1152_v20   ;;  %v944_v23 = vcvt.f32.s32 %v941_v17  ;;  %v1054_v28 = vpop.xlane.xlu2 %1053 }
 0x1bc   :  { %1223 = vperm.xlu2 %1872, %v1150_v22   ;;  %v1057_v51 = vcvt.f32.s32 %v1054_v28 }
 0x1bd   :  { %v946_v38 = vshll.u32 %v945_v21, 16 }
 0x1bf   :  { %v2397_v19 = vadd.s32 %v946_v38, %v944_v23  ;;  %v1450_v38 = vsel %vm1390_vm6, %v2281_v47, 0.0 }
 0x1c1   :  { %vm1092_vm11 = vcmp.eq.s32.totalorder %v2397_v19, %v2369_v5  ;;  %vm1095_vm2 = vcmp.eq.s32.totalorder %v2397_v19, %v2351_v53  ;;  %vm1090_vm0 = vcmp.eq.s32.totalorder %v2397_v19, %v2357_v35  ;;  %vm1093_vm3 = vcmp.eq.s32.totalorder %v2397_v19, %v2366_v59 }
 0x1c2   :  { %v2404_v24 = vpop.xlane.xlu1 %1042  ;;  %v1156_v4 = vsel %vm1092_vm11, %v2292_v41, 0.0  ;;  %v2409_v26 = vpop.xlane.xlu0 %1040  ;;  %v1159_v30 = vsel %vm1095_vm2, %v2292_v41, 0.0  ;;  %v1154_v55 = vsel %vm1090_vm0, %v2292_v41, 0.0  ;;  %v1157_v22 = vsel %vm1093_vm3, %v2292_v41, 0.0 }
 0x1c3   :  { %1241 = vperm.xlu0 %1874, %v1156_v4   ;;  %1525 = vperm.xlu1 %1873, %v1452_v25   ;;  %v1045_v23 = vcvt.f32.s32 %v2404_v24  ;;  %vm1096_vm6 = vcmp.eq.s32.totalorder %v2397_v19, %v2386_v0 }
 0x1c4   :  { %1232 = vperm.xlu2 %1872, %v1153_v27  }
 0x1c5   :  { %v1046_v28 = vshll.u32 %v1045_v23, 16 }
 0x1ca   :  { %v956_v29 = vpop.xlane.xlu1 %955 }
 0x1cb   :  { %v958_v62 = vcvt.f32.s32 %v956_v29  ;;  %1250 = vperm.xlu0 %1874, %v1159_v30   ;;  %1531 = vperm.xlu1 %1873, %v1454_v32   ;;  %v1044_v32 = vcvt.f32.s32 %v2409_v26 }
 0x1cc   :  { %1513 = vperm.xlu2 %1872, %v1448_v33   ;;  %v967_v34 = vpop.xlane.xlu2 %966  ;;  %v969_v36 = vpop.xlane.xlu0 %968  ;;  %v1160_v33 = vsel %vm1096_vm6, %v2292_v41, 0.0 }
 0x1cd   :  { %v959_v42 = vshll.u32 %v958_v62, 16  ;;  %v971_v39 = vcvt.f32.s32 %v969_v36  ;;  %v970_v46 = vcvt.f32.s32 %v967_v34 }
 0x1cf   :  { %v2422_v40 = vadd.s32 %v959_v42, %v957_v31  ;;  %v972_v45 = vshll.u32 %v971_v39, 16 }
 0x1d1   :  { %v973_v48 = vadd.s32 %v972_v45, %v970_v46  ;;  %vm1098_vm1 = vcmp.eq.s32.totalorder %v2422_v40, %v2357_v35  ;;  %vm1099_vm7 = vcmp.eq.s32.totalorder %v2422_v40, %v2354_v56  ;;  %vm1102_vm2 = vcmp.eq.s32.totalorder %v2422_v40, %v2389_v6 }
 0x1d2   :  { %v1056_v52 = vpop.xlane.xlu1 %1055  ;;  %v1162_v54 = vsel %vm1098_vm1, %v2377_v10, 0.0  ;;  %v2438_v58 = vsel %vm1099_vm7, %v2377_v10, 0.0  ;;  %v2455_v9 = vsel %vm1102_vm2, %v2377_v10, 0.0  ;;  %vm1105_vm5 = vcmp.eq.s32.totalorder %v2422_v40, %v2382_v15 }
 0x1d3   :  { %v1058_v57 = vcvt.f32.s32 %v1056_v52  ;;  %1259 = vperm.xlu0 %1874, %v1162_v54   ;;  %1235 = vperm.xlu1 %1873, %v1154_v55   ;;  %vm1107_vm8 = vcmp.eq.s32.totalorder %v973_v48, %v2354_v56  ;;  %vm1110_vm9 = vcmp.eq.s32.totalorder %v973_v48, %v2389_v6  ;;  %vm1113_vm11 = vcmp.eq.s32.totalorder %v973_v48, %v2382_v15 }
 0x1d4   :  { %1516 = vperm.xlu2 %1872, %v1449_v50   ;;  %v1069_v60 = vpop.xlane.xlu0 %1068  ;;  %v2441_v61 = vsel %vm1107_vm8, %v2346_v43, 0.0  ;;  %v2444_v1 = vsel %vm1110_vm9, %v2346_v43, 0.0  ;;  %v2452_v7 = vsel %vm1113_vm11, %v2346_v43, 0.0  ;;  %vm1100_vm12 = vcmp.eq.s32.totalorder %v2422_v40, %v2369_v5  ;;  %v1067_v14 = vpop.xlane.xlu2 %1066 }
 0x1d5   :  { %v1059_v2 = vshll.u32 %v1058_v57, 16  ;;  %v1071_v3 = vcvt.f32.s32 %v1069_v60  ;;  %vm1103_vm0 = vcmp.eq.s32.totalorder %v2422_v40, %v2351_v53  ;;  %vm1101_vm1 = vcmp.eq.s32.totalorder %v2422_v40, %v2366_v59 }
 0x1d6   :  { %v2468_v16 = vsel %vm1105_vm5, %v2377_v10, 0.0  ;;  %v2471_v11 = vsel %vm1100_vm12, %v2377_v10, 0.0  ;;  %v2474_v18 = vsel %vm1103_vm0, %v2377_v10, 0.0  ;;  %vm1108_vm7 = vcmp.eq.s32.totalorder %v973_v48, %v2369_v5 }
 0x1d7   :  { %v2463_v12 = vadd.s32 %v1059_v2, %v1057_v51  ;;  %v1072_v17 = vshll.u32 %v1071_v3, 16  ;;  %vm1106_vm8 = vcmp.eq.s32.totalorder %v973_v48, %v2357_v35  ;;  %vm1111_vm9 = vcmp.eq.s32.totalorder %v973_v48, %v2351_v53 }
 0x1d8   :  { %v1070_v20 = vcvt.f32.s32 %v1067_v14  ;;  %v1165_v21 = vsel %vm1101_vm1, %v2377_v10, 0.0  ;;  %v2490_v4 = vsel %vm1108_vm7, %v2346_v43, 0.0  ;;  %v2497_v27 = vsel %vm1111_vm9, %v2346_v43, 0.0 }
 0x1d9   :  { %vm1406_vm11 = vcmp.eq.s32.totalorder %v2463_v12, %v2369_v5  ;;  %vm1408_vm2 = vcmp.eq.s32.totalorder %v2463_v12, %v2389_v6  ;;  %v2502_v24 = vsel %vm1106_vm8, %v2346_v43, 0.0  ;;  %vm1410_vm3 = vcmp.eq.s32.totalorder %v2463_v12, %v2386_v0 }
 0x1da   :  { %v2492_v25 = vadd.s32 %v1072_v17, %v1070_v20  ;;  %vm1109_vm5 = vcmp.eq.s32.totalorder %v973_v48, %v2366_v59  ;;  %vm1104_vm12 = vcmp.eq.s32.totalorder %v2422_v40, %v2386_v0  ;;  %vm1112_vm0 = vcmp.eq.s32.totalorder %v973_v48, %v2386_v0 }
 0x1db   :  { %1268 = vperm.xlu0 %1874, %v1165_v21   ;;  %1244 = vperm.xlu1 %1873, %v1157_v22   ;;  %v2512_v29 = vsel %vm1109_vm5, %v2346_v43, 0.0  ;;  %vm1391_vm1 = vcmp.eq.s32.totalorder %v2371_v8, %v2366_v59  ;;  %v2518_v30 = vsel %vm1112_vm0, %v2346_v43, 0.0  ;;  %v1168_v62 = vsel %vm1104_vm12, %v2377_v10, 0.0 }
 0x1dc   :  { %1519 = vperm.xlu2 %1872, %v1450_v38   ;;  %vm1413_vm7 = vcmp.eq.s32.totalorder %v2492_v25, %v2354_v56  ;;  %vm1414_vm8 = vcmp.eq.s32.totalorder %v2492_v25, %v2369_v5  ;;  %vm1419_vm5 = vcmp.eq.s32.totalorder %v2492_v25, %v2382_v15  ;;  %v1047_v43 = vadd.s32 %v1046_v28, %v1044_v32 }
 0x1dd   :  { %v1451_v34 = vsel %vm1391_vm1, %v2281_v47, 0.0  ;;  %vm1404_vm0 = vcmp.eq.s32.totalorder %v2463_v12, %v2357_v35  ;;  %vm1091_vm9 = vcmp.eq.s32.totalorder %v2397_v19, %v2354_v56  ;;  %vm1409_vm6 = vcmp.eq.s32.totalorder %v2463_v12, %v2351_v53 }
 0x1de   :  { %vm1396_vm15 = vcmp.eq.s32.totalorder %v1047_v43, %v2357_v35  ;;  %v1464_v10 = vsel %vm1404_vm0, %v2332_v13, 0.0  ;;  %v1155_v36 = vsel %vm1091_vm9, %v2292_v41, 0.0  ;;  %vm1399_vm12 = vcmp.eq.s32.totalorder %v1047_v43, %v2366_v59 }
 0x1df   :  { %v1456_v26 = vsel %vm1396_vm15, %v2305_v63, 0.0  ;;  %vm1094_vm1 = vcmp.eq.s32.totalorder %v2397_v19, %v2389_v6  ;;  %v1469_v31 = vsel %vm1409_vm6, %v2332_v13, 0.0  ;;  %v1459_v42 = vsel %vm1399_vm12, %v2305_v63, 0.0 }
 0x1e0   :  { %v1158_v39 = vsel %vm1094_vm1, %v2292_v41, 0.0  ;;  %vm1401_vm15 = vcmp.eq.s32.totalorder %v1047_v43, %v2351_v53  ;;  %vm1097_vm9 = vcmp.eq.s32.totalorder %v2397_v19, %v2382_v15  ;;  %vm1397_vm0 = vcmp.eq.s32.totalorder %v1047_v43, %v2354_v56 }
 0x1e1   :  { %v1461_v40 = vsel %vm1401_vm15, %v2305_v63, 0.0  ;;  %v1161_v46 = vsel %vm1097_vm9, %v2292_v41, 0.0  ;;  %v1457_v45 = vsel %vm1397_vm0, %v2305_v63, 0.0  ;;  %vm1398_vm6 = vcmp.eq.s32.totalorder %v1047_v43, %v2369_v5 }
 0x1e2   :  { %v1458_v19 = vsel %vm1398_vm6, %v2305_v63, 0.0  ;;  %vm1403_vm12 = vcmp.eq.s32.totalorder %v1047_v43, %v2382_v15  ;;  %vm1400_vm1 = vcmp.eq.s32.totalorder %v1047_v43, %v2389_v6  ;;  %vm1415_vm15 = vcmp.eq.s32.totalorder %v2492_v25, %v2366_v59 }
 0x1e3   :  { %1277 = vperm.xlu0 %1874, %v1168_v62   ;;  %1253 = vperm.xlu1 %1873, %v1160_v33   ;;  %v1463_v50 = vsel %vm1403_vm12, %v2305_v63, 0.0  ;;  %v1460_v51 = vsel %vm1400_vm1, %v2305_v63, 0.0  ;;  %vm1405_vm9 = vcmp.eq.s32.totalorder %v2463_v12, %v2354_v56  ;;  %vm1402_vm0 = vcmp.eq.s32.totalorder %v1047_v43, %v2386_v0 }
 0x1e4   :  { %1522 = vperm.xlu2 %1872, %v1451_v34   ;;  %v1475_v54 = vsel %vm1415_vm15, %v2348_v49, 0.0  ;;  %v1465_v55 = vsel %vm1405_vm9, %v2332_v13, 0.0  ;;  %v1462_v57 = vsel %vm1402_vm0, %v2305_v63, 0.0  ;;  %vm811_vm6 = vcmask 1041409  }
 0x1e5   :  { %vm1411_vm12 = vcmp.eq.s32.totalorder %v2463_v12, %v2382_v15  ;;  %vm1407_vm1 = vcmp.eq.s32.totalorder %v2463_v12, %v2366_v59  ;;  %vm1345_vm15 = vcmask 1045509   ;;  %vm1347_vm9 = vcmask 1046534  }
 0x1e6   :  { %vm1349_vm0 = vcmask 1047559   ;;  %v1455_v56 = vsel %vm1395_vm13, %v2281_v47, 0.0  ;;  %vm2819_vm13 = vcmask 64512  }
 0x1eb   :  { %1561 = vperm.xlu0 %1874, %v1464_v10   ;;  %1537 = vperm.xlu1 %1873, %v1456_v26  }
 0x1ec   :  { %1238 = vperm.xlu2 %1872, %v1155_v36  }
 0x1f3   :  { %1576 = vperm.xlu0 %1874, %v1469_v31   ;;  %1546 = vperm.xlu1 %1873, %v1459_v42  }
 0x1f4   :  { %1247 = vperm.xlu2 %1872, %v1158_v39  }
 0x1fb   :  { %1286 = vperm.xlu0 %1874, %v2441_v61   ;;  %1552 = vperm.xlu1 %1873, %v1461_v40  }
 0x1fc   :  { %1256 = vperm.xlu2 %1872, %v1161_v46  }
 0x203   :  { %1295 = vperm.xlu0 %1874, %v2444_v1   ;;  %1262 = vperm.xlu1 %1873, %v2438_v58  }
 0x204   :  { %1540 = vperm.xlu2 %1872, %v1457_v45   ;;  %v1468_v45 = vsel %vm1408_vm2, %v2332_v13, 0.0  ;;  %vm1418_vm2 = vcmp.eq.s32.totalorder %v2492_v25, %v2386_v0 }
 0x206   :  { %v1212_v48 = vpop.permute.xlu2 %1211 }
 0x207   :  { %v1306_v60 = vperm.slane %v1212_v48, %v2193_v37 }
 0x20b   :  { %1304 = vperm.xlu0 %1874, %v2452_v7   ;;  %1271 = vperm.xlu1 %1873, %v2455_v9   ;;  %v1471_v7 = vsel %vm1411_vm12, %v2332_v13, 0.0  ;;  %v1467_v9 = vsel %vm1407_vm1, %v2332_v13, 0.0  ;;  %vm1412_vm12 = vcmp.eq.s32.totalorder %v2492_v25, %v2357_v35 }
 0x20c   :  { %1543 = vperm.xlu2 %1872, %v1458_v19   ;;  %v1472_v46 = vsel %vm1412_vm12, %v2348_v49, 0.0 }
 0x20e   :  { %v1218_v41 = vpop.permute.xlu2 %1217 }
 0x20f   :  { %v1308_v2 = vperm.slane %v1218_v41, %v2193_v37 }
 0x213   :  { %1558 = vperm.xlu0 %1874, %v1463_v50   ;;  %1280 = vperm.xlu1 %1873, %v2468_v16  }
 0x214   :  { %1549 = vperm.xlu2 %1872, %v1460_v51  }
 0x216   :  { %v1224_v52 = vpop.permute.xlu2 %1223 }
 0x217   :  { %v1310_v21 = vperm.slane %v1224_v52, %v2193_v37 }
 0x21b   :  { %1594 = vperm.xlu0 %1874, %v1475_v54   ;;  %1564 = vperm.xlu1 %1873, %v1465_v55   ;;  %v1470_v55 = vsel %vm1410_vm3, %v2332_v13, 0.0  ;;  %vm2818_vm3 = vcmp.eq.s32.totalorder %v2492_v25, %v2351_v53 }
 0x21c   :  { %1555 = vperm.xlu2 %1872, %v1462_v57   ;;  %v1477_v5 = vsel %vm2818_vm3, %v2348_v49, 0.0  ;;  %vm1704_vm3 = vcmask 60416  }
 0x21d   :  { %v1215_v58 = vpop.permute.xlu1 %1214  ;;  %v1227_v14 = vpop.permute.xlu0 %1226 }
 0x21e   :  { %v1233_v61 = vpop.permute.xlu2 %1232  ;;  %v1307_v1 = vperm.slane %v1215_v58, %v2193_v37  ;;  %v1311_v59 = vperm.slane %v1227_v14, %v2193_v37 }
 0x21f   :  { %v1313_v33 = vperm.slane %v1233_v61, %v2193_v37 }
 0x220   :  { %v1338_v3 = vsel %vm811_vm6, %v1307_v1, %v1306_v60 }
 0x221   :  { %v1340_v63 = vsel %vm1339_vm10, %v1308_v2, %v1338_v3 }
 0x223   :  { %1582 = vperm.xlu0 %1874, %v1471_v7   ;;  %1570 = vperm.xlu1 %1873, %v1467_v9  }
 0x224   :  { %1265 = vperm.xlu2 %1872, %v2471_v11  }
 0x225   :  { %v1221_v16 = vpop.permute.xlu1 %1220  ;;  %v1529_v11 = vpop.permute.xlu0 %1528 }
 0x226   :  { %v1514_v17 = vpop.permute.xlu2 %1513  ;;  %v1309_v20 = vperm.slane %v1221_v16, %v2193_v37  ;;  %v1613_v35 = vperm.slane %v1529_v11, %v2193_v37 }
 0x227   :  { %v1608_v43 = vperm.slane %v1514_v17, %v2193_v37 }
 0x228   :  { %v1342_v22 = vsel %vm1341_vm14, %v1309_v20, %v1340_v63 }
 0x229   :  { %v1344_v23 = vsel %vm1343_vm4, %v1310_v21, %v1342_v22 }
 0x22a   :  { %v1346_v38 = vsel %vm1345_vm15, %v1311_v59, %v1344_v23  ;;  %v1478_v59 = vsel %vm1418_vm2, %v2348_v49, 0.0 }
 0x22b   :  { %1289 = vperm.xlu1 %1873, %v2490_v4  }
 0x22c   :  { %1274 = vperm.xlu2 %1872, %v2474_v18   ;;  %v1466_v18 = vsel %vm1406_vm11, %v2332_v13, 0.0  ;;  %vm1416_vm11 = vcmp.eq.s32.totalorder %v2492_v25, %v2389_v6 }
 0x22d   :  { %v1230_v28 = vpop.permute.xlu1 %1229 }
 0x22e   :  { %v1517_v32 = vpop.permute.xlu2 %1516  ;;  %v1312_v62 = vperm.slane %v1230_v28, %v2193_v37 }
 0x22f   :  { %v1609_v34 = vperm.slane %v1517_v32, %v2193_v37 }
 0x230   :  { %v1348_v10 = vsel %vm1347_vm9, %v1312_v62, %v1346_v38  ;;  %v1473_v62 = vsel %vm1413_vm7, %v2348_v49, 0.0  ;;  %vm2820_vm7 = vmmov %vm2819_vm13 }
 0x231   :  { %v1640_v26 = vsel %vm811_vm6, %v1609_v34, %v1608_v43  ;;  %v2602_v4 = vsel %vm1349_vm0, %v1313_v33, %v1348_v10  ;;  %v1474_v34 = vsel %vm1414_vm8, %v2348_v49, 0.0  ;;  %vm2821_vm8 = vmmov %vm2820_vm7 }
 0x232   :  { %v1376_v53 = vsel %vm2819_vm13, %v2602_v4, 0.0  ;;  %vm1722_vm13 = vcmask 61441  }
 0x233   :  { %1298 = vperm.xlu1 %1873, %v2497_v27  }
 0x234   :  { %1567 = vperm.xlu2 %1872, %v1466_v18  }
 0x235   :  { %v1242_v36 = vpop.permute.xlu0 %1241  ;;  %v1526_v31 = vpop.permute.xlu1 %1525 }
 0x236   :  { %v1520_v42 = vpop.permute.xlu2 %1519  ;;  %v1612_v50 = vperm.slane %v1526_v31, %v2193_v37  ;;  %v1316_v13 = vperm.slane %v1242_v36, %v2193_v37 }
 0x237   :  { %v1610_v39 = vperm.slane %v1520_v42, %v2193_v37 }
 0x239   :  { %v1641_v40 = vsel %vm1339_vm10, %v1610_v39, %v1640_v26 }
 0x23b   :  { %1585 = vperm.xlu1 %1873, %v1472_v46  }
 0x23c   :  { %1573 = vperm.xlu2 %1872, %v1468_v45  }
 0x23d   :  { %v1251_v27 = vpop.permute.xlu0 %1250  ;;  %v1532_v48 = vpop.permute.xlu1 %1531 }
 0x23e   :  { %v1523_v19 = vpop.permute.xlu2 %1522  ;;  %v1614_v54 = vperm.slane %v1532_v48, %v2193_v37  ;;  %v1319_v6 = vperm.slane %v1251_v27, %v2193_v37  ;;  %v1479_v27 = vsel %vm1419_vm5, %v2348_v49, 0.0  ;;  %vm2822_vm5 = vmmov %vm2820_vm7 }
 0x23f   :  { %v1611_v41 = vperm.slane %v1523_v19, %v2193_v37  ;;  %vm2823_vm1 = vmmov %vm2822_vm5 }
 0x240   :  { %vm2824_vm12 = vmmov %vm2823_vm1 }
 0x241   :  { %v1642_v51 = vsel %vm1341_vm14, %v1611_v41, %v1641_v40 }
 0x242   :  { %v1643_v52 = vsel %vm1343_vm4, %v1612_v50, %v1642_v51 }
 0x243   :  { %1579 = vperm.xlu1 %1873, %v1470_v55   ;;  %v1644_v57 = vsel %vm1345_vm15, %v1613_v35, %v1643_v52 }
 0x244   :  { %1283 = vperm.xlu2 %1872, %v2502_v24   ;;  %v2631_v58 = vsel %vm1347_vm9, %v1614_v54, %v1644_v57  ;;  %v1476_v24 = vsel %vm1416_vm11, %v2348_v49, 0.0  ;;  %vm2825_vm11 = vmmov %vm2823_vm1 }
 0x245   :  { %v2633_v60 = vpop.permute.xlu0 %1259  ;;  %v1236_v61 = vpop.permute.xlu1 %1235 }
 0x246   :  { %v1239_v1 = vpop.permute.xlu2 %1238  ;;  %v1314_v2 = vperm.slane %v1236_v61, %v2193_v37  ;;  %v1322_v50 = vperm.slane %v2633_v60, %v2193_v37 }
 0x247   :  { %v1315_v3 = vperm.slane %v1239_v1, %v2193_v37 }
 0x249   :  { %v1351_v12 = vsel %vm811_vm6, %v1315_v3, %v1314_v2 }
 0x24a   :  { %v1352_v63 = vsel %vm1339_vm10, %v1316_v13, %v1351_v12 }
 0x24b   :  { %1597 = vperm.xlu1 %1873, %v1476_v24  }
 0x24c   :  { %1292 = vperm.xlu2 %1872, %v2512_v29  }
 0x24d   :  { %v2644_v7 = vpop.permute.xlu0 %1268  ;;  %v1245_v9 = vpop.permute.xlu1 %1244 }
 0x24e   :  { %v1248_v14 = vpop.permute.xlu2 %1247  ;;  %v1317_v16 = vperm.slane %v1245_v9, %v2193_v37  ;;  %v1325_v4 = vperm.slane %v2644_v7, %v2193_v37 }
 0x24f   :  { %v1318_v17 = vperm.slane %v1248_v14, %v2193_v37 }
 0x250   :  { %v1353_v20 = vsel %vm1341_vm14, %v1317_v16, %v1352_v63 }
 0x251   :  { %v1354_v21 = vsel %vm1343_vm4, %v1318_v17, %v1353_v20 }
 0x252   :  { %v1355_v29 = vsel %vm1345_vm15, %v1319_v6, %v1354_v21 }
 0x253   :  { %1603 = vperm.xlu1 %1873, %v1478_v59  }
 0x254   :  { %1301 = vperm.xlu2 %1872, %v2518_v30  }
 0x255   :  { %v2656_v22 = vpop.permute.xlu0 %1277  ;;  %v1254_v23 = vpop.permute.xlu1 %1253 }
 0x256   :  { %v1257_v38 = vpop.permute.xlu2 %1256  ;;  %v1320_v11 = vperm.slane %v1254_v23, %v2193_v37  ;;  %v1328_v16 = vperm.slane %v2656_v22, %v2193_v37 }
 0x257   :  { %v1321_v0 = vperm.slane %v1257_v38, %v2193_v37 }
 0x258   :  { %v1356_v28 = vsel %vm1347_vm9, %v1320_v11, %v1355_v29 }
 0x259   :  { %v2662_v32 = vsel %vm1349_vm0, %v1321_v0, %v1356_v28 }
 0x25c   :  { %1588 = vperm.xlu2 %1872, %v1473_v62  }
 0x25d   :  { %v2668_v30 = vpop.permute.xlu0 %1561  ;;  %v1538_v33 = vpop.permute.xlu1 %1537 }
 0x25e   :  { %v1541_v43 = vpop.permute.xlu2 %1540  ;;  %v1616_v8 = vperm.slane %v1538_v33, %v2193_v37  ;;  %v1624_v23 = vperm.slane %v2668_v30, %v2193_v37 }
 0x25f   :  { %v1617_v45 = vperm.slane %v1541_v43, %v2193_v37 }
 0x261   :  { %v1647_v35 = vsel %vm811_vm6, %v1617_v45, %v1616_v8 }
 0x264   :  { %1591 = vperm.xlu2 %1872, %v1474_v34  }
 0x265   :  { %v2674_v10 = vpop.permute.xlu0 %1576  ;;  %v1547_v26 = vpop.permute.xlu1 %1546 }
 0x266   :  { %v1544_v18 = vpop.permute.xlu2 %1543  ;;  %v1619_v51 = vperm.slane %v1547_v26, %v2193_v37  ;;  %v1629_v26 = vperm.slane %v2674_v10, %v2193_v37 }
 0x267   :  { %v1618_v47 = vperm.slane %v1544_v18, %v2193_v37 }
 0x269   :  { %v1648_v49 = vsel %vm1339_vm10, %v1618_v47, %v1647_v35 }
 0x26a   :  { %v1649_v57 = vsel %vm1341_vm14, %v1619_v51, %v1648_v49 }
 0x26c   :  { %1534 = vperm.xlu2 %1872, %v1455_v56  }
 0x26d   :  { %v2680_v36 = vpop.permute.xlu0 %1286  ;;  %v1553_v31 = vpop.permute.xlu1 %1552 }
 0x26e   :  { %v1550_v42 = vpop.permute.xlu2 %1549  ;;  %v1621_v60 = vperm.slane %v1553_v31, %v2193_v37  ;;  %v1331_v45 = vperm.slane %v2680_v36, %v2193_v37 }
 0x26f   :  { %v1620_v15 = vperm.slane %v1550_v42, %v2193_v37 }
 0x271   :  { %v1650_v1 = vsel %vm1343_vm4, %v1620_v15, %v1649_v57 }
 0x272   :  { %v1651_v12 = vsel %vm1345_vm15, %v1621_v60, %v1650_v1 }
 0x274   :  { %1600 = vperm.xlu2 %1872, %v1477_v5  }
 0x275   :  { %v2686_v39 = vpop.permute.xlu0 %1295  ;;  %v1263_v40 = vpop.permute.xlu1 %1262 }
 0x276   :  { %v1556_v46 = vpop.permute.xlu2 %1555  ;;  %v1323_v48 = vperm.slane %v1263_v40, %v2193_v37 }
 0x277   :  { %v1622_v2 = vperm.slane %v1556_v46, %v2193_v37 }
 0x278   :  { %v1358_v54 = vsel %vm811_vm6, %v1323_v48, %v1322_v50  ;;  %v1334_v50 = vperm.slane %v2686_v39, %v2193_v37 }
 0x279   :  { %v1652_v14 = vsel %vm1347_vm9, %v1622_v2, %v1651_v12 }
 0x27c   :  { %1606 = vperm.xlu2 %1872, %v1479_v27  }
 0x27d   :  { %v2698_v19 = vpop.permute.xlu0 %1304  ;;  %1377 = vadd.xlane.f32.xlu1 %v1376_v53  ;;  %v1272_v41 = vpop.permute.xlu1 %1271 }
 0x27e   :  { %v1266_v52 = vpop.permute.xlu2 %1265  ;;  %v1326_v24 = vperm.slane %v1272_v41, %v2193_v37  ;;  %v1337_v15 = vperm.slane %v2698_v19, %v2193_v37 }
 0x27f   :  { %v1324_v25 = vperm.slane %v1266_v52, %v2193_v37 }
 0x281   :  { %v1359_v55 = vsel %vm1339_vm10, %v1324_v25, %v1358_v54 }
 0x282   :  { %v1360_v61 = vsel %vm1341_vm14, %v1325_v4, %v1359_v55 }
 0x283   :  { %v1361_v17 = vsel %vm1343_vm4, %v1326_v24, %v1360_v61 }
 0x285   :  { %v1559_v3 = vpop.permute.xlu0 %1558  ;;  %v1281_v13 = vpop.permute.xlu1 %1280 }
 0x286   :  { %v1623_v63 = vperm.slane %v1559_v3, %v2193_v37  ;;  %v1275_v7 = vpop.permute.xlu2 %1274  ;;  %v1329_v42 = vperm.slane %v1281_v13, %v2193_v37 }
 0x287   :  { %v1327_v9 = vperm.slane %v1275_v7, %v2193_v37 }
 0x288   :  { %v1653_v6 = vsel %vm1349_vm0, %v1623_v63, %v1652_v14 }
 0x289   :  { %v1362_v20 = vsel %vm1345_vm15, %v1327_v9, %v1361_v17  ;;  %v1675_v21 = vsel %vm2820_vm7, %v1653_v6, 0.0 }
 0x28a   :  { %1676 = vadd.xlane.f32.xlu1 %v1675_v21  ;;  %v1363_v59 = vsel %vm1347_vm9, %v1328_v16, %v1362_v20 }
 0x28b   :  { %v1364_v40 = vsel %vm1349_vm0, %v1329_v42, %v1363_v59 }
 0x28c   :  { %v1382_v8 = vsel %vm2821_vm8, %v1364_v40, 0.0  ;;  %v1999_v40 = vmov 0.0   ;;  %vm1806_vm8 = vcmask 3072  }
 0x28d   :  { %v1565_v29 = vpop.permute.xlu1 %1564  ;;  %v1595_v3 = vpop.permute.xlu0 %1594 }
 0x28e   :  { %v1568_v38 = vpop.permute.xlu2 %1567  ;;  %v1625_v11 = vperm.slane %v1565_v29, %v2193_v37  ;;  %v1635_v17 = vperm.slane %v1595_v3, %v2193_v37  ;;  %v1379_v29 = vsel %vm2824_vm12, %v2662_v32, 0.0 }
 0x28f   :  { %v1626_v22 = vperm.slane %v1568_v38, %v2193_v37 }
 0x290   :  { %v1654_v0 = vsel %vm811_vm6, %v1625_v11, %v1624_v23 }
 0x291   :  { %v1655_v28 = vsel %vm1339_vm10, %v1626_v22, %v1654_v0 }
 0x295   :  { %v1571_v62 = vpop.permute.xlu1 %1570  ;;  %v1583_v21 = vpop.permute.xlu0 %1582 }
 0x296   :  { %v1574_v33 = vpop.permute.xlu2 %1573  ;;  %v1627_v43 = vperm.slane %v1571_v62, %v2193_v37  ;;  %v1631_v22 = vperm.slane %v1583_v21, %v2193_v37 }
 0x297   :  { %v1628_v34 = vperm.slane %v1574_v33, %v2193_v37 }
 0x298   :  { %v1656_v30 = vsel %vm1341_vm14, %v1627_v43, %v1655_v28 }
 0x299   :  { %v1657_v18 = vsel %vm1343_vm4, %v1628_v34, %v1656_v30 }
 0x29a   :  { %v1658_v56 = vsel %vm1345_vm15, %v1629_v26, %v1657_v18 }
 0x29d   :  { %v1290_v5 = vpop.permute.xlu1 %1289 }
 0x29e   :  { %v1284_v31 = vpop.permute.xlu2 %1283  ;;  %v1332_v10 = vperm.slane %v1290_v5, %v2193_v37 }
 0x29f   :  { %v1330_v46 = vperm.slane %v1284_v31, %v2193_v37 }
 0x2a1   :  { %v1365_v47 = vsel %vm811_vm6, %v1331_v45, %v1330_v46 }
 0x2a2   :  { %v1366_v53 = vsel %vm1339_vm10, %v1332_v10, %v1365_v47 }
 0x2a5   :  { %1383 = vadd.xlane.f32.xlu2 %v1382_v8  ;;  %v1299_v35 = vpop.permute.xlu1 %1298 }
 0x2a6   :  { %v1293_v27 = vpop.permute.xlu2 %1292  ;;  %v1335_v51 = vperm.slane %v1299_v35, %v2193_v37 }
 0x2a7   :  { %v1333_v48 = vperm.slane %v1293_v27, %v2193_v37 }
 0x2a9   :  { %v1367_v41 = vsel %vm1341_vm14, %v1333_v48, %v1366_v53 }
 0x2aa   :  { %v1368_v36 = vsel %vm1343_vm4, %v1334_v50, %v1367_v41 }
 0x2ab   :  { %v1369_v25 = vsel %vm1345_vm15, %v1335_v51, %v1368_v36 }
 0x2ad   :  { %v1586_v39 = vpop.permute.xlu1 %1585 }
 0x2ae   :  { %v1302_v52 = vpop.permute.xlu2 %1301  ;;  %v1632_v7 = vperm.slane %v1586_v39, %v2193_v37 }
 0x2af   :  { %v1336_v49 = vperm.slane %v1302_v52, %v2193_v37 }
 0x2b1   :  { %v1370_v4 = vsel %vm1347_vm9, %v1336_v49, %v1369_v25 }
 0x2b2   :  { %v1371_v54 = vsel %vm1349_vm0, %v1337_v15, %v1370_v4  ;;  %v1735_v15 = vsel %vm1722_vm13, %v2264_v44, 0.0 }
 0x2b3   :  { %v1385_v55 = vsel %vm2822_vm5, %v1371_v54, 0.0  ;;  %v2000_v54 = vmov 8.0   ;;  %vm1786_vm5 = vcmask 27648  }
 0x2b4   :  { %1386 = vadd.xlane.f32.xlu2 %v1385_v55  ;;  %1883 = vrcp.f32 %v2000_v54 }
 0x2b5   :  { %v1580_v61 = vpop.permute.xlu1 %1579 }
 0x2b6   :  { %v1589_v57 = vpop.permute.xlu2 %1588  ;;  %v1630_v6 = vperm.slane %v1580_v61, %v2193_v37 }
 0x2b7   :  { %v1633_v13 = vperm.slane %v1589_v57, %v2193_v37 }
 0x2b8   :  { %v1659_v11 = vsel %vm1347_vm9, %v1630_v6, %v1658_v56 }
 0x2b9   :  { %v1661_v9 = vsel %vm811_vm6, %v1633_v13, %v1632_v7  ;;  %v1660_v43 = vsel %vm1349_vm0, %v1631_v22, %v1659_v11 }
 0x2ba   :  { %v1678_v26 = vsel %vm2825_vm11, %v1660_v43, 0.0  ;;  %v1884_v55 = vpop.eup %1883 }
 0x2bb   :  { %v1727_v39 = vmul.f32 8.0, %v1884_v55  ;;  %vm1731_vm7 = vweird.f32 %v1884_v55 }
 0x2bd   :  { %v1598_v19 = vpop.permute.xlu1 %1597  ;;  %v1728_v57 = vsub.f32 1.0, %v1727_v39 }
 0x2be   :  { %v1592_v60 = vpop.permute.xlu2 %1591  ;;  %v1636_v59 = vperm.slane %v1598_v19, %v2193_v37 }
 0x2bf   :  { %v1634_v24 = vperm.slane %v1592_v60, %v2193_v37  ;;  %v1729_v61 = vmul.f32 %v1884_v55, %v1728_v57 }
 0x2c1   :  { %v1662_v14 = vsel %vm1339_vm10, %v1634_v24, %v1661_v9 }
 0x2c2   :  { %v1663_v20 = vsel %vm1341_vm14, %v1635_v17, %v1662_v14 }
 0x2c3   :  { %v1664_v38 = vsel %vm1343_vm4, %v1636_v59, %v1663_v20  ;;  %vm2826_vm4 = vmmov %vm2823_vm1 }
 0x2c5   :  { %v1604_v23 = vpop.permute.xlu1 %1603 }
 0x2c6   :  { %v1535_v1 = vpop.permute.xlu2 %1534  ;;  %v1638_v28 = vperm.slane %v1604_v23, %v2193_v37 }
 0x2c7   :  { %v1615_v2 = vperm.slane %v1535_v1, %v2193_v37  ;;  %v1730_v1 = vadd.f32 %v1884_v55, %v1729_v61 }
 0x2c9   :  { %v1646_v12 = vsel %vm1349_vm0, %v1615_v2, %v2631_v58  ;;  %v1732_v2 = vsel %vm1731_vm7, %v1884_v55, %v1730_v1 }
 0x2ca   :  { %v1672_v63 = vsel %vm2823_vm1, %v1646_v12, 0.0  ;;  %vm1826_vm1 = vcmp.eq.s32.totalorder %v2193_v37, 0 }
 0x2cb   :  { %1673 = vadd.xlane.f32.xlu0 %v1672_v63 }
 0x2ce   :  { %v1601_v16 = vpop.permute.xlu2 %1600 }
 0x2cf   :  { %v1637_v58 = vperm.slane %v1601_v16, %v2193_v37 }
 0x2d1   :  { %v1665_v0 = vsel %vm1345_vm15, %v1637_v58, %v1664_v38 }
 0x2d2   :  { %v1666_v34 = vsel %vm1347_vm9, %v1638_v28, %v1665_v0 }
 0x2d3   :  { %1380 = vadd.xlane.f32.xlu0 %v1379_v29 }
 0x2d6   :  { %v1607_v62 = vpop.permute.xlu2 %1606 }
 0x2d7   :  { %v1639_v33 = vperm.slane %v1607_v62, %v2193_v37  ;;  %v1777_v62 = vadd.s32 1, %v2193_v37 }
 0x2d9   :  { %v1667_v32 = vsel %vm1349_vm0, %v1639_v33, %v1666_v34 }
 0x2da   :  { %v1681_v30 = vsel %vm2826_vm4, %v1667_v32, 0.0 }
 0x2db   :  { %1679 = vadd.xlane.f32.xlu0 %v1678_v26  ;;  %1682 = vadd.xlane.f32.xlu1 %v1681_v30 }
 0x2ef   :  { %1719 = vrot.lane.b32.xlu0 %v2264_v44, %s1998_s2 }
 0x2f0   :  { %v1378_v18 = vpop.xlane.xlu1 %1377 }
 0x2fd   :  { %v1677_v42 = vpop.xlane.xlu1 %1676 }
 0x318   :  { %v1384_v31 = vpop.xlane.xlu2 %1383 }
 0x327   :  { %v1387_v45 = vpop.xlane.xlu2 %1386 }
 0x33e   :  { %v1674_v56 = vpop.xlane.xlu0 %1673 }
 0x33f   :  { %vm1684_vm2 = vcmp.gt.f32.partialorder %v1674_v56, %v1378_v18 }
 0x340   :  { %v1688_v8 = vsel %vm1684_vm2, 1.0, %v1999_v40 }
 0x341   :  { %v1696_v48 = vperm.slane %v1688_v8, %v2193_v37 }
 0x346   :  { %v1381_v5 = vpop.xlane.xlu0 %1380 }
 0x347   :  { %vm1685_vm15 = vcmp.gt.f32.partialorder %v1677_v42, %v1381_v5 }
 0x348   :  { %v1689_v46 = vsel %vm1685_vm15, 1.0, %v1999_v40 }
 0x349   :  { %v1697_v10 = vperm.slane %v1689_v46, %v2193_v37  ;;  %v2002_v46 = vmov 4.0  }
 0x34b   :  { %v1700_v36 = vsel %vm811_vm6, %v1697_v10, %v1696_v48 }
 0x34e   :  { %v1680_v47 = vpop.xlane.xlu0 %1679  ;;  %v1683_v27 = vpop.xlane.xlu1 %1682 }
 0x34f   :  { %vm1686_vm9 = vcmp.gt.f32.partialorder %v1680_v47, %v1384_v31  ;;  %vm1687_vm0 = vcmp.gt.f32.partialorder %v1683_v27, %v1387_v45 }
 0x350   :  { %v1690_v53 = vsel %vm1686_vm9, 1.0, %v1999_v40  ;;  %v1691_v41 = vsel %vm1687_vm0, 1.0, %v1999_v40  ;;  %v2001_v40 = vmov 16.0  }
 0x351   :  { %v1698_v50 = vperm.slane %v1690_v53, %v2193_v37  ;;  %v1699_v35 = vperm.slane %v1691_v41, %v2193_v37  ;;  %1885 = vrcp.f32 %v2001_v40 }
 0x352   :  { %1887 = vrcp.f32 %v2002_v46 }
 0x353   :  { %v1701_v51 = vsel %vm1339_vm10, %v1698_v50, %v1700_v36 }
 0x354   :  { %v1702_v52 = vsel %vm1341_vm14, %v1699_v35, %v1701_v51 }
 0x355   :  { %v1705_v49 = vsel %vm1704_vm3, %v1702_v52, 0.0 }
 0x356   :  { %1706 = vadd.xlane.f32.xlu2 %v1705_v49 }
 0x357   :  { %v1886_v8 = vpop.eup %1885 }
 0x358   :  { %v1888_v47 = vpop.eup %1887  ;;  %v1798_v27 = vmul.f32 16.0, %v1886_v8 }
 0x359   :  { %v1818_v53 = vmul.f32 4.0, %v1888_v47 }
 0x35a   :  { %v1799_v41 = vsub.f32 1.0, %v1798_v27 }
 0x35b   :  { %v1819_v51 = vsub.f32 1.0, %v1818_v53 }
 0x35c   :  { %v1800_v49 = vmul.f32 %v1886_v8, %v1799_v41 }
 0x35e   :  { %1736 = vadd.xlane.f32.xlu2 %v1735_v15  ;;  %v1801_v55 = vadd.f32 %v1886_v8, %v1800_v49 }
 0x361   :  { %v1720_v25 = vpop.permute.xlu0 %1719 }
 0x362   :  { %v1723_v4 = vsel %vm1722_vm13, %v1720_v25, 0.0 }
 0x363   :  { %1724 = vadd.xlane.f32.xlu1 %v1723_v4  ;;  %v1820_v4 = vmul.f32 %v1888_v47, %v1819_v51 }
 0x3c9   :  { %v1707_v60 = vpop.xlane.xlu2 %1706 }
 0x3ca   :  { %v1708_v13 = vmul.f32 0.125, %v1707_v60  ;;  %v1821_v60 = vadd.f32 %v1888_v47, %v1820_v4 }
 0x3cc   :  { %v1743_v63 = vperm.slane %v1708_v13, 2  ;;  %v1742_v7 = vperm.slane %v1708_v13, 1  ;;  %v1741_v9 = vperm.slane %v1708_v13, 0  ;;  %v1744_v21 = vperm.slane %v1708_v13, 3 }
 0x3cd   :  { %v1807_v0 = vsel %vm1806_vm8, %v1708_v13, 0.0 }
 0x3d1   :  { %v1737_v3 = vpop.xlane.xlu2 %1736 }
 0x3d2   :  { %v1738_v12 = vmul.f32 %v1737_v3, %v1732_v2 }
 0x3d6   :  { %v1725_v19 = vpop.xlane.xlu1 %1724 }
 0x3d7   :  { %v1733_v24 = vmul.f32 %v1732_v2, %v1725_v19 }
 0x3d9   :  { %v1739_v44 = vsub.f32 %v1733_v24, %v1738_v12 }
 0x3db   :  { %v1751_v14 = vadd.f32 %v1743_v63, %v1739_v44  ;;  %v1750_v16 = vadd.f32 %v1742_v7, %v1739_v44  ;;  %v1749_v17 = vadd.f32 %v1741_v9, %v1739_v44  ;;  %v1752_v38 = vadd.f32 %v1744_v21, %v1739_v44 }
 0x3dd   :  { %v1755_v6 = vadd.f32 1.0, %v1751_v14  ;;  %v1754_v20 = vadd.f32 1.0, %v1750_v16  ;;  %v1753_v58 = vadd.f32 1.0, %v1749_v17  ;;  %v1756_v11 = vadd.f32 1.0, %v1752_v38 }
 0x3df   :  { %v1759_v59 = vmax.f32 %v1755_v6, 0.0  ;;  %v1758_v29 = vmax.f32 %v1754_v20, 0.0  ;;  %v1757_v23 = vmax.f32 %v1753_v58, 0.0  ;;  %v1760_v22 = vmax.f32 %v1756_v11, 0.0 }
 0x3e1   :  { %1772 = vperm.xlu0 %1874, %v1759_v59   ;;  %1769 = vperm.xlu2 %1872, %v1758_v29  }
 0x3e2   :  { %1766 = vperm.xlu1 %1873, %v1757_v23  }
 0x3e9   :  { %1775 = vperm.xlu0 %1874, %v1760_v22  }
 0x40c   :  { %1808 = vadd.xlane.f32.xlu1 %v1807_v0 }
 0x43b   :  { %v1770_v43 = vpop.permute.xlu2 %1769 }
 0x43c   :  { %v1779_v32 = vperm.slane %v1770_v43, %v1777_v62 }
 0x453   :  { %v1773_v28 = vpop.permute.xlu0 %1772 }
 0x454   :  { %v1767_v33 = vpop.permute.xlu1 %1766  ;;  %v1780_v26 = vperm.slane %v1773_v28, %v1777_v62 }
 0x455   :  { %v1778_v34 = vperm.slane %v1767_v33, %v1777_v62 }
 0x457   :  { %v1782_v30 = vsel %vm811_vm6, %v1779_v32, %v1778_v34  ;;  %vm1827_vm6 = vcmp.eq.s32.totalorder %v2193_v37, 1 }
 0x458   :  { %v1783_v31 = vsel %vm1339_vm10, %v1780_v26, %v1782_v30  ;;  %vm1802_vm10 = vweird.f32 %v1886_v8 }
 0x459   :  { %v1803_v1 = vsel %vm1802_vm10, %v1886_v8, %v1801_v55 }
 0x45b   :  { %v1776_v18 = vpop.permute.xlu0 %1775 }
 0x45c   :  { %v1781_v56 = vperm.slane %v1776_v18, %v1777_v62 }
 0x45e   :  { %v1784_v42 = vsel %vm1341_vm14, %v1781_v56, %v1783_v31  ;;  %vm1822_vm14 = vweird.f32 %v1888_v47 }
 0x45f   :  { %v1787_v5 = vsel %vm1786_vm5, %v1784_v42, 0.0  ;;  %v1823_v3 = vsel %vm1822_vm14, %v1888_v47, %v1821_v60 }
 0x460   :  { %1788 = vadd.xlane.f32.xlu0 %v1787_v5 }
 0x47f   :  { %v1809_v45 = vpop.xlane.xlu1 %1808 }
 0x480   :  { %v1810_v10 = vrot.slane %v1809_v45, 4 }
 0x482   :  { %v1811_v48 = vadd.f32 %v1810_v10, %v1809_v45 }
 0x484   :  { %v1812_v35 = vrot.slane %v1811_v48, 2 }
 0x486   :  { %v1813_v15 = vadd.f32 %v1812_v35, %v1811_v48 }
 0x488   :  { %v1814_v57 = vrot.slane %v1813_v15, 1 }
 0x48a   :  { %v1815_v2 = vadd.f32 %v1814_v57, %v1813_v15 }
 0x4d3   :  { %v1789_v50 = vpop.xlane.xlu0 %1788 }
 0x4d4   :  { %v1790_v36 = vrot.slane %v1789_v50, 4 }
 0x4d6   :  { %v1791_v52 = vadd.f32 %v1790_v36, %v1789_v50 }
 0x4d8   :  { %v1792_v25 = vrot.slane %v1791_v52, 2 }
 0x4da   :  { %v1793_v54 = vadd.f32 %v1792_v25, %v1791_v52 }
 0x4dc   :  { %v1794_v39 = vrot.slane %v1793_v54, 1 }
 0x4de   :  { %v1795_v61 = vadd.f32 %v1794_v39, %v1793_v54 }
 0x4e0   :  { %1840 = vpush %v1795_v61 }
 0x4e1   :  { %1842 = vpush %v1803_v1 }
 0x4e2   :  { %1844 = vpush %v1815_v2 }
 0x4e3   :  { %1846 = vpush %v1823_v3 }
 0x511   :  { %s1841_s3 = spop %1840 }
 0x512   :  { %s1843_s9 = spop %1842 }
 0x513   :  { %s1805_s10 = smul.f32 %s1843_s9, %s1841_s3  ;;  %s1845_s11 = spop %1844 }
 0x514   :  { %s1847_s12 = spop %1846 }
 0x515   :  { %s1825_s13 = smul.f32 %s1847_s12, %s1845_s11  ;;  %v1830_v13 = vstv %s1805_s10 }
 0x517   :  { %v1828_v19 = vstv %s1825_s13 }
 0x518   :  { %v1829_v12 = vsel %vm1827_vm6, %v1828_v19, 0.0 }
 0x519   :  { %v1831_v24 = vsel %vm1826_vm1, %v1830_v13, %v1829_v12 }
 0x51a   :  { %1832 = vst [vmem:[%s2812_s4] sm:$0x1] %v1831_v24 }
 0x51b   :  { %1837 = vsyncpa [#allocation3], 1 }
 0x51c   :  { %1838 = vsyncpa [#allocation5], 1 }
 0x51d   :  { %1839 = vsyncpa [#allocation8], 1 }

</bundles_post_ra>
